<compile_context>
chip_gen: v6e
topology: v6e:2x2x1
jax: 0.10.0
libtpu: 0.0.40
codegen_flags: <defaults>
</compile_context>

<pallas_src>
import functools

import jax
import jax.numpy as jnp
from jax.experimental import pallas as pl
from jax.experimental.pallas import tpu as pltpu

KH = KW = 3   # 3x3 "same" conv
CPAD = 8      # Cin zero-padded to a full sublane granule per tap


def conv_relu_kernel(x_ref, w_ref, b_ref, m_ref, o_ref, patches_ref, *, W, N):
    """One grid step == all frames of all batch elements.

    x_ref:       (CPAD, N)       f32   input, channels zero-padded 4->8,
                                       lane axis = (b, t, h, w) flattened
    w_ref:       (Cout, 9*CPAD)  bf16  conv weights, tap-major, zero-padded
    b_ref:       (Cout, 1)       f32   conv bias
    m_ref:       (9, N)          f32   per-tap edge masks (tiled per frame)
    o_ref:       (Cout, N)       f32   output, lane-dense
    patches_ref: (9*CPAD, N)     bf16  VMEM scratch holding im2col patches
    """
    x = x_ref[...]                                      # (CPAD, N) f32

    # Build im2col patches: the 2-D shift (dy-1, dx-1) of a "same" 3x3 conv
    # becomes a flat lane roll by -(dy-1)*W - (dx-1); the precomputed mask
    # zeroes every out-of-image / cross-frame / wrapped lane.  Each masked tap
    # slab is written straight to VMEM scratch (never concatenated in vregs).
    k = 0
    for dy in range(KH):
        for dx in range(KW):
            off = (dy - 1) * W + (dx - 1)
            if off == 0:
                tap = x                                  # center tap: mask == 1
            else:
                shifted = pltpu.roll(x, shift=(-off) % N, axis=1)
                tap = shifted * m_ref[k:k + 1, :]        # (CPAD,N)*(1,N)
            patches_ref[k * CPAD:(k + 1) * CPAD, :] = tap.astype(patches_ref.dtype)
            k += 1

    # One wide MXU matmul: (Cout, 72) @ (72, N) with f32 accumulation,
    # then bias + ReLU, lane-dense store.
    y = jnp.dot(w_ref[...], patches_ref[...], preferred_element_type=jnp.float32)
    y = jnp.maximum(y + b_ref[...], 0.0)
    o_ref[...] = y.astype(o_ref.dtype)


def base_forward(x, w, b):
    """x: [B, T, Cin, H, W], w: [Cout, Cin, 3, 3], b: [Cout] -> [B, T, Cout, H, W]."""
    B, T, Cin, H, W = x.shape
    Cout = w.shape[0]
    HW = H * W
    N = B * T * HW

    # ---- layout plumbing in plain JAX (tiny arrays, outside the kernel) ----
    # input -> channel-major (CPAD, N), lane axis = (b, t, h, w)
    x2 = jnp.transpose(x, (2, 0, 1, 3, 4)).reshape(Cin, N)
    x2 = jnp.pad(x2, ((0, CPAD - Cin), (0, 0)))
    # weights -> (Cout, 9*CPAD) bf16, tap-major ((dy,dx), ci), Cin zero-padded
    w2 = jnp.transpose(w, (0, 2, 3, 1))                        # (Cout,3,3,Cin)
    w2 = jnp.pad(w2, ((0, 0), (0, 0), (0, 0), (0, CPAD - Cin)))
    w2 = w2.reshape(Cout, KH * KW * CPAD).astype(jnp.bfloat16)
    b2 = b.reshape(Cout, 1).astype(jnp.float32)
    # per-tap "same"-padding edge masks, flat (9, HW), tiled to (9, N)
    hh = jnp.arange(H)
    ww = jnp.arange(W)
    mlist = []
    for dy in range(KH):
        for dx in range(KW):
            sy, sx = dy - 1, dx - 1
            vh = (hh + sy >= 0) & (hh + sy < H)
            vw = (ww + sx >= 0) & (ww + sx < W)
            mlist.append((vh[:, None] & vw[None, :]).reshape(HW))
    masks = jnp.stack(mlist, axis=0).astype(x.dtype)           # (9, HW)
    masks = jnp.tile(masks, (1, B * T))                        # (9, N)

    kernel = functools.partial(conv_relu_kernel, W=W, N=N)

    out = pl.pallas_call(
        kernel,
        out_shape=jax.ShapeDtypeStruct((Cout, N), x.dtype),
        grid=(1,),
        in_specs=[
            pl.BlockSpec((CPAD, N), lambda i: (0, 0)),
            pl.BlockSpec((Cout, KH * KW * CPAD), lambda i: (0, 0)),
            pl.BlockSpec((Cout, 1), lambda i: (0, 0)),
            pl.BlockSpec((KH * KW, N), lambda i: (0, 0)),
        ],
        out_specs=pl.BlockSpec((Cout, N), lambda i: (0, 0)),
        scratch_shapes=[pltpu.VMEM((KH * KW * CPAD, N), jnp.bfloat16)],
        compiler_params=pltpu.CompilerParams(
            # Single step: best on v5e/v6e (grid is a sequential loop there);
            # on v7x a 2-way megacore split of ~1 us of work does not pay for
            # its sync overhead at this size.  Working set < 1.5 MiB, so no
            # vmem_limit override is needed on any generation (incl. v7x 64MiB).
            dimension_semantics=("arbitrary",),
        ),
    )(x2, w2, b2, masks)

    # (Cout, B*T*HW) -> (B, T, Cout, H, W)
    out = out.reshape(Cout, B, T, H, W)
    return jnp.transpose(out, (1, 2, 0, 3, 4))


def ref_forward(x, w, b):
    """Pure-JAX reference of the same forward (per-frame conv + bias + ReLU)."""
    B, T, Cin, H, W = x.shape
    xf = x.reshape(B * T, Cin, H, W)
    y = jax.lax.conv_general_dilated(
        xf, w, window_strides=(1, 1), padding=((1, 1), (1, 1)),
        dimension_numbers=("NCHW", "OIHW", "NCHW"),
        precision=jax.lax.Precision.HIGHEST)
    y = jnp.maximum(y + b[None, :, None, None], 0.0)
    return y.reshape(B, T, w.shape[0], H, W)


if __name__ == "__main__":
    B, T, Cin, Cout, H, W = 2, 6, 4, 8, 16, 16   # timestep=6 frames

    key = jax.random.PRNGKey(0)
    kx, kw, kb = jax.random.split(key, 3)
    x = jax.random.normal(kx, (B, T, Cin, H, W), dtype=jnp.float32)
    # deterministic "basemodel" parameters (Conv2d(4, 8, 3, padding=1) + ReLU)
    w = 0.1 * jax.random.normal(kw, (Cout, Cin, KH, KW), dtype=jnp.float32)
    bias = 0.05 * jax.random.normal(kb, (Cout,), dtype=jnp.float32)

    out = jax.block_until_ready(base_forward(x, w, bias))
    ref = jax.block_until_ready(ref_forward(x, w, bias))

    assert out.shape == (B, T, Cout, H, W), out.shape
    # Tolerance covers bf16 MXU operands (f32 accumulation) vs the
    # HIGHEST-precision f32 reference: for a K=36 contraction at these
    # magnitudes the rounding error stays well below 2e-2, while any real
    # indexing / mask / weight-layout bug produces errors of O(0.1) or more.
    err = float(jnp.max(jnp.abs(out - ref)))
    assert err < 2e-2, err
    print("KERNEL_OK")
</pallas_src>

<mosaic_0001>
module attributes {stable_mosaic.version = 11 : i64} {
  func.func @conv_relu_kernel(%arg0: i32, %arg1: memref<8x3072xf32, #tpu.memory_space<vmem>>, %arg2: memref<8x72xbf16, #tpu.memory_space<vmem>>, %arg3: memref<8x1xf32, #tpu.memory_space<vmem>>, %arg4: memref<9x3072xf32, #tpu.memory_space<vmem>>, %arg5: memref<8x3072xf32, #tpu.memory_space<vmem>>, %arg6: memref<72x3072xbf16, #tpu.memory_space<vmem>>) attributes {dimension_semantics = [#tpu.dimension_semantics<arbitrary>], iteration_bounds = array<i64: 1>, scalar_prefetch = 0 : i64, scratch_operands = 1 : i64, tpu.core_type = #tpu.core_type<tc>, window_params = [{pipeline_mode = #tpu.pipeline_mode<synchronous>, transform_indices = @transform_0, window_bounds = array<i64: 8, 3072>}, {pipeline_mode = #tpu.pipeline_mode<synchronous>, transform_indices = @transform_1, window_bounds = array<i64: 8, 72>}, {pipeline_mode = #tpu.pipeline_mode<synchronous>, transform_indices = @transform_2, window_bounds = array<i64: 8, 1>}, {pipeline_mode = #tpu.pipeline_mode<synchronous>, transform_indices = @transform_3, window_bounds = array<i64: 9, 3072>}, {pipeline_mode = #tpu.pipeline_mode<synchronous>, transform_indices = @transform_4, window_bounds = array<i64: 8, 3072>}]} {
    %c0 = arith.constant 0 : index
    %c0_0 = arith.constant 0 : index
    %0 = vector.load %arg1[%c0, %c0_0] : memref<8x3072xf32, #tpu.memory_space<vmem>>, vector<8x3072xf32>
    %c17_i32 = arith.constant 17 : i32
    %1 = tpu.dynamic_rotate %0 by %c17_i32 dim 1 : vector<8x3072xf32>, i32 -> vector<8x3072xf32>
    %c0_1 = arith.constant 0 : index
    %c0_2 = arith.constant 0 : index
    %2 = vector.load %arg4[%c0_1, %c0_2] : memref<9x3072xf32, #tpu.memory_space<vmem>>, vector<1x3072xf32>
    %3 = vector.broadcast %2 : vector<1x3072xf32> to vector<8x3072xf32>
    %4 = arith.mulf %1, %3 : vector<8x3072xf32>
    %5 = arith.truncf %4 : vector<8x3072xf32> to vector<8x3072xbf16>
    %c0_3 = arith.constant 0 : index
    %c0_4 = arith.constant 0 : index
    %6 = vector.load %arg6[%c0_3, %c0_4] : memref<72x3072xbf16, #tpu.memory_space<vmem>>, vector<8x3072xbf16>
    tpu.vector_store %arg6[%c0_3, %c0_4], %5 {strides = array<i32>} : memref<72x3072xbf16, #tpu.memory_space<vmem>>, vector<8x3072xbf16>,
    %c16_i32 = arith.constant 16 : i32
    %7 = tpu.dynamic_rotate %0 by %c16_i32 dim 1 : vector<8x3072xf32>, i32 -> vector<8x3072xf32>
    %c1 = arith.constant 1 : index
    %c0_5 = arith.constant 0 : index
    %8 = vector.load %arg4[%c1, %c0_5] : memref<9x3072xf32, #tpu.memory_space<vmem>>, vector<1x3072xf32>
    %9 = vector.broadcast %8 : vector<1x3072xf32> to vector<8x3072xf32>
    %10 = arith.mulf %7, %9 : vector<8x3072xf32>
    %11 = arith.truncf %10 : vector<8x3072xf32> to vector<8x3072xbf16>
    %c8 = arith.constant 8 : index
    %c0_6 = arith.constant 0 : index
    %12 = vector.load %arg6[%c8, %c0_6] : memref<72x3072xbf16, #tpu.memory_space<vmem>>, vector<8x3072xbf16>
    tpu.vector_store %arg6[%c8, %c0_6], %11 {strides = array<i32>} : memref<72x3072xbf16, #tpu.memory_space<vmem>>, vector<8x3072xbf16>,
    %c15_i32 = arith.constant 15 : i32
    %13 = tpu.dynamic_rotate %0 by %c15_i32 dim 1 : vector<8x3072xf32>, i32 -> vector<8x3072xf32>
    %c2 = arith.constant 2 : index
    %c0_7 = arith.constant 0 : index
    %14 = vector.load %arg4[%c2, %c0_7] : memref<9x3072xf32, #tpu.memory_space<vmem>>, vector<1x3072xf32>
    %15 = vector.broadcast %14 : vector<1x3072xf32> to vector<8x3072xf32>
    %16 = arith.mulf %13, %15 : vector<8x3072xf32>
    %17 = arith.truncf %16 : vector<8x3072xf32> to vector<8x3072xbf16>
    %c16 = arith.constant 16 : index
    %c0_8 = arith.constant 0 : index
    %18 = vector.load %arg6[%c16, %c0_8] : memref<72x3072xbf16, #tpu.memory_space<vmem>>, vector<8x3072xbf16>
    tpu.vector_store %arg6[%c16, %c0_8], %17 {strides = array<i32>} : memref<72x3072xbf16, #tpu.memory_space<vmem>>, vector<8x3072xbf16>,
    %c1_i32 = arith.constant 1 : i32
    %19 = tpu.dynamic_rotate %0 by %c1_i32 dim 1 : vector<8x3072xf32>, i32 -> vector<8x3072xf32>
    %c3 = arith.constant 3 : index
    %c0_9 = arith.constant 0 : index
    %20 = vector.load %arg4[%c3, %c0_9] : memref<9x3072xf32, #tpu.memory_space<vmem>>, vector<1x3072xf32>
    %21 = vector.broadcast %20 : vector<1x3072xf32> to vector<8x3072xf32>
    %22 = arith.mulf %19, %21 : vector<8x3072xf32>
    %23 = arith.truncf %22 : vector<8x3072xf32> to vector<8x3072xbf16>
    %c24 = arith.constant 24 : index
    %c0_10 = arith.constant 0 : index
    %24 = vector.load %arg6[%c24, %c0_10] : memref<72x3072xbf16, #tpu.memory_space<vmem>>, vector<8x3072xbf16>
    tpu.vector_store %arg6[%c24, %c0_10], %23 {strides = array<i32>} : memref<72x3072xbf16, #tpu.memory_space<vmem>>, vector<8x3072xbf16>,
    %25 = arith.truncf %0 : vector<8x3072xf32> to vector<8x3072xbf16>
    %c32 = arith.constant 32 : index
    %c0_11 = arith.constant 0 : index
    %26 = vector.load %arg6[%c32, %c0_11] : memref<72x3072xbf16, #tpu.memory_space<vmem>>, vector<8x3072xbf16>
    tpu.vector_store %arg6[%c32, %c0_11], %25 {strides = array<i32>} : memref<72x3072xbf16, #tpu.memory_space<vmem>>, vector<8x3072xbf16>,
    %c3071_i32 = arith.constant 3071 : i32
    %27 = tpu.dynamic_rotate %0 by %c3071_i32 dim 1 : vector<8x3072xf32>, i32 -> vector<8x3072xf32>
    %c5 = arith.constant 5 : index
    %c0_12 = arith.constant 0 : index
    %28 = vector.load %arg4[%c5, %c0_12] : memref<9x3072xf32, #tpu.memory_space<vmem>>, vector<1x3072xf32>
    %29 = vector.broadcast %28 : vector<1x3072xf32> to vector<8x3072xf32>
    %30 = arith.mulf %27, %29 : vector<8x3072xf32>
    %31 = arith.truncf %30 : vector<8x3072xf32> to vector<8x3072xbf16>
    %c40 = arith.constant 40 : index
    %c0_13 = arith.constant 0 : index
    %32 = vector.load %arg6[%c40, %c0_13] : memref<72x3072xbf16, #tpu.memory_space<vmem>>, vector<8x3072xbf16>
    tpu.vector_store %arg6[%c40, %c0_13], %31 {strides = array<i32>} : memref<72x3072xbf16, #tpu.memory_space<vmem>>, vector<8x3072xbf16>,
    %c3057_i32 = arith.constant 3057 : i32
    %33 = tpu.dynamic_rotate %0 by %c3057_i32 dim 1 : vector<8x3072xf32>, i32 -> vector<8x3072xf32>
    %c6 = arith.constant 6 : index
    %c0_14 = arith.constant 0 : index
    %34 = vector.load %arg4[%c6, %c0_14] : memref<9x3072xf32, #tpu.memory_space<vmem>>, vector<1x3072xf32>
    %35 = vector.broadcast %34 : vector<1x3072xf32> to vector<8x3072xf32>
    %36 = arith.mulf %33, %35 : vector<8x3072xf32>
    %37 = arith.truncf %36 : vector<8x3072xf32> to vector<8x3072xbf16>
    %c48 = arith.constant 48 : index
    %c0_15 = arith.constant 0 : index
    %38 = vector.load %arg6[%c48, %c0_15] : memref<72x3072xbf16, #tpu.memory_space<vmem>>, vector<8x3072xbf16>
    tpu.vector_store %arg6[%c48, %c0_15], %37 {strides = array<i32>} : memref<72x3072xbf16, #tpu.memory_space<vmem>>, vector<8x3072xbf16>,
    %c3056_i32 = arith.constant 3056 : i32
    %39 = tpu.dynamic_rotate %0 by %c3056_i32 dim 1 : vector<8x3072xf32>, i32 -> vector<8x3072xf32>
    %c7 = arith.constant 7 : index
    %c0_16 = arith.constant 0 : index
    %40 = vector.load %arg4[%c7, %c0_16] : memref<9x3072xf32, #tpu.memory_space<vmem>>, vector<1x3072xf32>
    %41 = vector.broadcast %40 : vector<1x3072xf32> to vector<8x3072xf32>
    %42 = arith.mulf %39, %41 : vector<8x3072xf32>
    %43 = arith.truncf %42 : vector<8x3072xf32> to vector<8x3072xbf16>
    %c56 = arith.constant 56 : index
    %c0_17 = arith.constant 0 : index
    %44 = vector.load %arg6[%c56, %c0_17] : memref<72x3072xbf16, #tpu.memory_space<vmem>>, vector<8x3072xbf16>
    tpu.vector_store %arg6[%c56, %c0_17], %43 {strides = array<i32>} : memref<72x3072xbf16, #tpu.memory_space<vmem>>, vector<8x3072xbf16>,
    %c3055_i32 = arith.constant 3055 : i32
    %45 = tpu.dynamic_rotate %0 by %c3055_i32 dim 1 : vector<8x3072xf32>, i32 -> vector<8x3072xf32>
    %c8_18 = arith.constant 8 : index
    %c0_19 = arith.constant 0 : index
    %46 = vector.load %arg4[%c8_18, %c0_19] : memref<9x3072xf32, #tpu.memory_space<vmem>>, vector<1x3072xf32>
    %47 = vector.broadcast %46 : vector<1x3072xf32> to vector<8x3072xf32>
    %48 = arith.mulf %45, %47 : vector<8x3072xf32>
    %49 = arith.truncf %48 : vector<8x3072xf32> to vector<8x3072xbf16>
    %c64 = arith.constant 64 : index
    %c0_20 = arith.constant 0 : index
    %50 = vector.load %arg6[%c64, %c0_20] : memref<72x3072xbf16, #tpu.memory_space<vmem>>, vector<8x3072xbf16>
    tpu.vector_store %arg6[%c64, %c0_20], %49 {strides = array<i32>} : memref<72x3072xbf16, #tpu.memory_space<vmem>>, vector<8x3072xbf16>,
    %c0_21 = arith.constant 0 : index
    %c0_22 = arith.constant 0 : index
    %51 = vector.load %arg2[%c0_21, %c0_22] : memref<8x72xbf16, #tpu.memory_space<vmem>>, vector<8x72xbf16>
    %c0_23 = arith.constant 0 : index
    %c0_24 = arith.constant 0 : index
    %52 = vector.load %arg6[%c0_23, %c0_24] : memref<72x3072xbf16, #tpu.memory_space<vmem>>, vector<72x3072xbf16>
    %cst = arith.constant dense<0.000000e+00> : vector<8x3072xf32>
    %53 = tpu.matmul %51, %52, %cst {dimension_numbers = #tpu.dot_dimension_numbers<[1], [0], [0], [1], [0, 0, 1, 1], [], []>} : vector<8x72xbf16>, vector<72x3072xbf16>, vector<8x3072xf32> -> vector<8x3072xf32>
    %c0_25 = arith.constant 0 : index
    %c0_26 = arith.constant 0 : index
    %54 = vector.load %arg3[%c0_25, %c0_26] : memref<8x1xf32, #tpu.memory_space<vmem>>, vector<8x1xf32>
    %55 = vector.broadcast %54 : vector<8x1xf32> to vector<8x3072xf32>
    %56 = arith.addf %53, %55 : vector<8x3072xf32>
    %cst_27 = arith.constant 0.000000e+00 : f32
    %57 = vector.broadcast %cst_27 : f32 to vector<8x3072xf32>
    %58 = arith.maximumf %56, %57 : vector<8x3072xf32>
    %c0_28 = arith.constant 0 : index
    %c0_29 = arith.constant 0 : index
    %59 = vector.load %arg5[%c0_28, %c0_29] : memref<8x3072xf32, #tpu.memory_space<vmem>>, vector<8x3072xf32>
    tpu.vector_store %arg5[%c0_28, %c0_29], %58 {strides = array<i32>} : memref<8x3072xf32, #tpu.memory_space<vmem>>, vector<8x3072xf32>,
    return
  }
  func.func @transform_0(%arg0: i32) -> (i32, i32) {
    %c0_i32 = arith.constant 0 : i32
    %c0_i32_0 = arith.constant 0 : i32
    %c0_i32_1 = arith.constant 0 : i32
    return %c0_i32, %c0_i32_0 : i32, i32
  }
  func.func @transform_1(%arg0: i32) -> (i32, i32) {
    %c0_i32 = arith.constant 0 : i32
    %c0_i32_0 = arith.constant 0 : i32
    %c0_i32_1 = arith.constant 0 : i32
    return %c0_i32, %c0_i32_0 : i32, i32
  }
  func.func @transform_2(%arg0: i32) -> (i32, i32) {
    %c0_i32 = arith.constant 0 : i32
    %c0_i32_0 = arith.constant 0 : i32
    %c0_i32_1 = arith.constant 0 : i32
    return %c0_i32, %c0_i32_0 : i32, i32
  }
  func.func @transform_3(%arg0: i32) -> (i32, i32) {
    %c0_i32 = arith.constant 0 : i32
    %c0_i32_0 = arith.constant 0 : i32
    %c0_i32_1 = arith.constant 0 : i32
    return %c0_i32, %c0_i32_0 : i32, i32
  }
  func.func @transform_4(%arg0: i32) -> (i32, i32) {
    %c0_i32 = arith.constant 0 : i32
    %c0_i32_0 = arith.constant 0 : i32
    %c0_i32_1 = arith.constant 0 : i32
    return %c0_i32, %c0_i32_0 : i32, i32
  }
}

</mosaic_0001>

<bundles_post_ra>
// kernel: tpu_custom_call.1
= control target key start
LH: loop header
LB: loop body
LE: loop exit
PB: predicated region body
PF: predicated region fallthrough
CT: control target
= control target key end

     0   :  { %9 = vsyncpa [#allocation4], 0  ;;  %s6433_s0 = inlined_call_operand.hbm [shape: f32[8,3072], index: 0, kind: input, shape index: {}]   ;;  %s6434_s1 = inlined_call_operand.vmem [shape: bf16[8,72], index: 1, kind: input, shape index: {}]   ;;  %s6435_s2 = inlined_call_operand.vmem [shape: f32[8,1], index: 2, kind: input, shape index: {}]   ;;  %s6436_s3 = inlined_call_operand.hbm [shape: f32[9,3072], index: 3, kind: input, shape index: {}]   ;;  %s6437_s4 = inlined_call_operand.hbm [shape: f32[8,3072], index: 4, kind: output, shape index: {}]  }
   0x1   :  { %10 = vsyncpa [#allocation7], 0 }
   0x2   :  { %11 = vsyncpa [#allocation5], 0  ;;  %s4755_s15 = smov [#allocation3]   ;;  %s4756_s17 = smov [#allocation6]  }
   0x3   :  { %s18_s16 = sshll.u32 %s4755_s15, 4  ;;  %s31_s18 = sshll.u32 %s4756_s17, 4  ;;  %s19_s16 = int_to_ptr.vmem [resolvable:$true] %s18_s16  ;;  %s32_s18 = int_to_ptr.vmem [resolvable:$true] %s31_s18 }
   0x4   :  { %s4697_s19 = scalar_lea.vmem %s19_s16, 3072  ;;  %p4702_p1 = scmp.lt.s32.totalorder %s19_s16, %s19_s16 }
   0x5   :  { %p4698_p0 = scmp.ne.s32.totalorder %s19_s16, %s4697_s19  ;;  %p4703_p2 = scmp.lt.s32.totalorder %s4697_s19, %s4697_s19 }
   0x7   :  { %p4704_p3 = por %p4703_p2, %p4702_p1 }
   0x9   :  { %p4705_p4 = pnand %p4704_p3, %p4698_p0 }
   0xb   :  { %4708 = shalt.err (!%p4705_p4)
}
   0xc   :  { %21 = dma.hbm_to_vmem [thread:$0]  %s6433_s0, 3072, %s19_s16, [#allocation4]  }
   0xd   :  { %s4717_s22 = scalar_lea.vmem %s32_s18, 6144  ;;  %p4722_p6 = scmp.lt.s32.totalorder %s32_s18, %s32_s18 }
   0xe   :  { %p4718_p5 = scmp.ne.s32.totalorder %s32_s18, %s4717_s22  ;;  %p4723_p7 = scmp.lt.s32.totalorder %s4717_s22, %s4717_s22 }
  0x10   :  { %p4724_p8 = por %p4723_p7, %p4722_p6 }
  0x12   :  { %p4725_p9 = pnand %p4724_p8, %p4718_p5 }
  0x14   :  { %4728 = shalt.err (!%p4725_p9)
}
  0x15   :  { %s4757_s23 = smov 3072   ;;  %s4758_s24 = smov 192  }
  0x16   :  { %37 = dma.hbm_to_vmem [thread:$0]  %s6436_s3, 6144, %s32_s18, [#allocation7], %s4757_s23, %s4757_s23, %s4758_s24  }
  0x17   :  { %4749 = dma.done.wait [#allocation4], 3072  }
  0x18   :  { %4750 = vsyncadd [#allocation4], 4294964224 }
  0x19   :  { %4751 = dma.done.wait [#allocation7], 6144  }
  0x1a   :  { %4752 = vsyncadd [#allocation7], 4294961152  ;;  %v4800_v0 = vld [vmem:[#allocation3 + $0x10] sm:$0xff]  ;;  %v4802_v1 = vld [vmem:[#allocation3] sm:$0xff]  ;;  %s4759_s0 = smov 17   ;;  %s4760_s27 = smov 111   ;;  %v117_v11 = vlaneseq }
  0x1b   :  { %73 = vrot.lane.b32.xlu1 %v4800_v0, %s4759_s0  ;;  %69 = vrot.lane.b32.xlu0 %v4802_v1, %s4759_s0  ;;  %v4808_v2 = vld [vmem:[#allocation3 + $0x8] sm:$0xff]  ;;  %v4818_v3 = vld [vmem:[#allocation3 + $0x20] sm:$0xff]  ;;  %v4820_v4 = vld [vmem:[#allocation3 + $0x18] sm:$0xff]  ;;  %s4761_s3 = smov 113   ;;  %s4762_s28 = smov 112   ;;  %v6438_v6 = vmov 0  }
  0x1c   :  { %s4763_s29 = smov 127   ;;  %s4764_s30 = smov 15   ;;  %v68_v5 = vld [vmem:[#allocation3 + $0xb8] sm:$0xff]  ;;  %3662 = vmatprep.mubr.bf16.mxu0 %v6438_v6  ;;  %3703 = vmatprep.mubr.bf16.mxu1 %v6438_v6  ;;  %v4889_v7 = vld [vmem:[#allocation3 + $0x30] sm:$0xff]  ;;  %v4891_v8 = vld [vmem:[#allocation3 + $0x28] sm:$0xff]  ;;  %v4937_v16 = vshrl.u32 %v117_v11, 7 }
  0x1d   :  { %s4765_s5 = smov 1   ;;  %s4766_s6 = smov 16   ;;  %4680 = vset.pattern.permute.xlu0 %v6438_v6  ;;  %v4897_v9 = vld [vmem:[#allocation3 + $0x40] sm:$0xff]  ;;  %v4899_v10 = vld [vmem:[#allocation3 + $0x38] sm:$0xff]  ;;  %v4950_v20 = vand.u32 127, %v117_v11  ;;  %vm3557_vm1 = vcmask 1043456  }
  0x1e   :  { %v2632_v12 = vld [vmem:[#allocation6 + $0xc0] ss:$8 sm:$0xf]  ;;  %v4944_v17 = vsub.s32 0, %v4937_v16  ;;  %v4953_v21 = vsub.s32 1, %v4937_v16  ;;  %v4958_v23 = vsub.s32 3, %v4937_v16 }
  0x1f   :  { %2558 = vrot.lane.b32.xlu1 %v4802_v1, %s4760_s27  ;;  %71 = vrot.lane.b32.xlu0 %v4808_v2, %s4759_s0  ;;  %v2633_v13 = vld [vmem:[#allocation6 + $0xc0] ss:$8 sm:$0xf0]  ;;  %vm2606_vm0 = vcmp.lt.s32.totalorder %v4950_v20, 111  ;;  %v4970_v26 = vsub.s32 2, %v4937_v16  ;;  %vm1926_vm2 = vcmp.lt.s32.totalorder %v4950_v20, 113 }
  0x20   :  { %v4946_v18 = vor.u32 %v2633_v13, %v2632_v12  ;;  %v1952_v40 = vld [vmem:[#allocation6 + $0x6] ss:$8 sm:$0xf]  ;;  %v2292_v46 = vld [vmem:[#allocation6 + $0x7] ss:$8 sm:$0xf] }
  0x21   :  { %v1953_v43 = vld [vmem:[#allocation6 + $0x6] ss:$8 sm:$0xf0]  ;;  %v2293_v47 = vld [vmem:[#allocation6 + $0x7] ss:$8 sm:$0xf0] }
  0x22   :  { %v2653_v24 = vrot.slane %v4946_v18, %v4953_v21  ;;  %v2649_v25 = vrot.slane %v4946_v18, %v4944_v17  ;;  %v2661_v31 = vrot.slane %v4946_v18, %v4958_v23  ;;  %v2657_v34 = vrot.slane %v4946_v18, %v4970_v26 }
  0x23   :  { %2562 = vrot.lane.b32.xlu1 %v4800_v0, %s4760_s27  ;;  %2560 = vrot.lane.b32.xlu0 %v4808_v2, %s4760_s27  ;;  %v4998_v52 = vor.u32 %v1953_v43, %v1952_v40  ;;  %v5005_v54 = vor.u32 %v2293_v47, %v2292_v46  ;;  %vm2266_vm3 = vcmp.lt.s32.totalorder %v4950_v20, 112  ;;  %v5064_v46 = vld [vmem:[#allocation3 + $0x58] sm:$0xff]  ;;  %vm1586_vm4 = vcmp.lt.s32.totalorder %v4950_v20, 127 }
  0x24   :  { %vm798_vm5 = vcmp.lt.s32.totalorder %v4950_v20, 15  ;;  %vm1138_vm6 = vcmp.lt.s32.totalorder %v4950_v20, 1  ;;  %vm119_vm7 = vcmp.lt.s32.totalorder %v4950_v20, 17  ;;  %vm458_vm8 = vcmp.lt.s32.totalorder %v4950_v20, 16 }
  0x25   :  { %v1973_v57 = vrot.slane %v4998_v52, %v4953_v21  ;;  %v2313_v58 = vrot.slane %v5005_v54, %v4953_v21  ;;  %v1977_v60 = vrot.slane %v4998_v52, %v4970_v26  ;;  %v1981_v63 = vrot.slane %v4998_v52, %v4958_v23 }
  0x26   :  { %v2317_v11 = vrot.slane %v5005_v54, %v4970_v26  ;;  %v2321_v12 = vrot.slane %v5005_v54, %v4958_v23  ;;  %vm3553_vm9 = vcmask 588800  }
  0x27   :  { %2566 = vrot.lane.b32.xlu1 %v4818_v3, %s4760_s27  ;;  %2564 = vrot.lane.b32.xlu0 %v4820_v4, %s4760_s27 }
  0x2b   :  { %1882 = vrot.lane.b32.xlu1 %v4800_v0, %s4761_s3  ;;  %1880 = vrot.lane.b32.xlu0 %v4808_v2, %s4761_s3 }
  0x2f   :  { %1886 = vrot.lane.b32.xlu1 %v4818_v3, %s4761_s3  ;;  %1884 = vrot.lane.b32.xlu0 %v4820_v4, %s4761_s3 }
  0x33   :  { %2222 = vrot.lane.b32.xlu1 %v4800_v0, %s4762_s28  ;;  %2220 = vrot.lane.b32.xlu0 %v4808_v2, %s4762_s28 }
  0x37   :  { %2226 = vrot.lane.b32.xlu1 %v4818_v3, %s4762_s28  ;;  %2224 = vrot.lane.b32.xlu0 %v4820_v4, %s4762_s28 }
  0x3b   :  { %2218 = vrot.lane.b32.xlu1 %v4802_v1, %s4762_s28  ;;  %1878 = vrot.lane.b32.xlu0 %v4802_v1, %s4761_s3 }
  0x3f   :  { %1542 = vrot.lane.b32.xlu1 %v4800_v0, %s4763_s29  ;;  %1540 = vrot.lane.b32.xlu0 %v4808_v2, %s4763_s29 }
  0x43   :  { %1546 = vrot.lane.b32.xlu1 %v4818_v3, %s4763_s29  ;;  %1544 = vrot.lane.b32.xlu0 %v4820_v4, %s4763_s29 }
  0x47   :  { %750 = vrot.lane.b32.xlu1 %v4802_v1, %s4764_s30  ;;  %1538 = vrot.lane.b32.xlu0 %v4802_v1, %s4763_s29 }
  0x4b   :  { %754 = vrot.lane.b32.xlu1 %v4800_v0, %s4764_s30  ;;  %752 = vrot.lane.b32.xlu0 %v4808_v2, %s4764_s30 }
  0x4f   :  { %1090 = vrot.lane.b32.xlu1 %v4802_v1, %s4765_s5  ;;  %756 = vrot.lane.b32.xlu0 %v4820_v4, %s4764_s30 }
  0x53   :  { %1094 = vrot.lane.b32.xlu1 %v4800_v0, %s4765_s5  ;;  %1092 = vrot.lane.b32.xlu0 %v4808_v2, %s4765_s5 }
  0x57   :  { %796 = vrot.lane.b32.xlu1 %v68_v5, %s4764_s30  ;;  %1096 = vrot.lane.b32.xlu0 %v4820_v4, %s4765_s5 }
  0x5b   :  { %75 = vrot.lane.b32.xlu1 %v4820_v4, %s4759_s0  ;;  %1136 = vrot.lane.b32.xlu0 %v68_v5, %s4765_s5 }
  0x5f   :  { %412 = vrot.lane.b32.xlu1 %v4808_v2, %s4766_s6  ;;  %410 = vrot.lane.b32.xlu0 %v4802_v1, %s4766_s6 }
  0x63   :  { %416 = vrot.lane.b32.xlu1 %v4820_v4, %s4766_s6  ;;  %414 = vrot.lane.b32.xlu0 %v4800_v0, %s4766_s6 }
  0x67   :  { %456 = vrot.lane.b32.xlu1 %v68_v5, %s4766_s6  ;;  %115 = vrot.lane.b32.xlu0 %v68_v5, %s4759_s0 }
  0x6b   :  { %2570 = vrot.lane.b32.xlu1 %v4889_v7, %s4760_s27  ;;  %2568 = vrot.lane.b32.xlu0 %v4891_v8, %s4760_s27 }
  0x6f   :  { %2574 = vrot.lane.b32.xlu1 %v4897_v9, %s4760_s27  ;;  %2572 = vrot.lane.b32.xlu0 %v4899_v10, %s4760_s27 }
  0x73   :  { %1890 = vrot.lane.b32.xlu1 %v4889_v7, %s4761_s3  ;;  %1888 = vrot.lane.b32.xlu0 %v4891_v8, %s4761_s3 }
  0x77   :  { %1894 = vrot.lane.b32.xlu1 %v4897_v9, %s4761_s3  ;;  %1892 = vrot.lane.b32.xlu0 %v4899_v10, %s4761_s3 }
  0x7b   :  { %2230 = vrot.lane.b32.xlu1 %v4889_v7, %s4762_s28  ;;  %2228 = vrot.lane.b32.xlu0 %v4891_v8, %s4762_s28 }
  0x7f   :  { %2234 = vrot.lane.b32.xlu1 %v4897_v9, %s4762_s28  ;;  %2232 = vrot.lane.b32.xlu0 %v4899_v10, %s4762_s28 }
  0x83   :  { %1550 = vrot.lane.b32.xlu1 %v4889_v7, %s4763_s29  ;;  %1548 = vrot.lane.b32.xlu0 %v4891_v8, %s4763_s29 }
  0x87   :  { %1554 = vrot.lane.b32.xlu1 %v4897_v9, %s4763_s29  ;;  %1552 = vrot.lane.b32.xlu0 %v4899_v10, %s4763_s29 }
  0x8b   :  { %760 = vrot.lane.b32.xlu1 %v4891_v8, %s4764_s30  ;;  %758 = vrot.lane.b32.xlu0 %v4818_v3, %s4764_s30 }
  0x8d   :  { %v4933_v14 = vpop.permute.xlu1 %73  ;;  %v4935_v15 = vpop.permute.xlu0 %69 }
  0x8f   :  { %764 = vrot.lane.b32.xlu1 %v4899_v10, %s4764_s30  ;;  %762 = vrot.lane.b32.xlu0 %v4889_v7, %s4764_s30 }
  0x91   :  { %v4948_v19 = vpop.permute.xlu1 %2558  ;;  %v4955_v22 = vpop.permute.xlu0 %71 }
  0x93   :  { %1100 = vrot.lane.b32.xlu1 %v4891_v8, %s4765_s5  ;;  %1098 = vrot.lane.b32.xlu0 %v4818_v3, %s4765_s5 }
  0x95   :  { %v2563_v27 = vpop.permute.xlu1 %2562  ;;  %v2561_v28 = vpop.permute.xlu0 %2560 }
  0x96   :  { %v2629_v29 = vsel %vm2606_vm0, %v4948_v19, %v2561_v28  ;;  %v2628_v30 = vsel %vm2606_vm0, %v2561_v28, %v2563_v27  ;;  %v1613_v28 = vld [vmem:[#allocation6 + $0x5] ss:$8 sm:$0xf0] }
  0x97   :  { %1104 = vrot.lane.b32.xlu1 %v4899_v10, %s4765_s5  ;;  %1102 = vrot.lane.b32.xlu0 %v4889_v7, %s4765_s5  ;;  %v2767_v32 = vmul.f32 %v2653_v24, %v2628_v30  ;;  %v2766_v33 = vmul.f32 %v2649_v25, %v2629_v29  ;;  %v5041_v30 = vld [vmem:[#allocation3 + $0x50] sm:$0xff] }
  0x99   :  { %v4985_v35 = vpop.permute.xlu1 %2566  ;;  %v2565_v36 = vpop.permute.xlu0 %2564  ;;  %v4643_v37 = vpack.c.bf16 %v2767_v32, %v2767_v32  ;;  %v4642_v38 = vpack.c.bf16 %v2766_v33, %v2766_v33 }
  0x9a   :  { %v2627_v39 = vsel %vm2606_vm0, %v2563_v27, %v2565_v36  ;;  %v2626_v41 = vsel %vm2606_vm0, %v2565_v36, %v4985_v35  ;;  %v1612_v27 = vld [vmem:[#allocation6 + $0x5] ss:$8 sm:$0xf]  ;;  %v2309_v36 = vrot.slane %v5005_v54, %v4944_v17 }
  0x9b   :  { %79 = vrot.lane.b32.xlu1 %v4891_v8, %s4759_s0  ;;  %77 = vrot.lane.b32.xlu0 %v4818_v3, %s4759_s0  ;;  %v3559_v42 = vsel %vm3557_vm1, %v4642_v38, 0  ;;  %v2769_v44 = vmul.f32 %v2661_v31, %v2626_v41  ;;  %v2768_v45 = vmul.f32 %v2657_v34, %v2627_v39  ;;  %v5043_v31 = vld [vmem:[#allocation3 + $0x48] sm:$0xff]  ;;  %v5056_v41 = vor.u32 %v1613_v28, %v1612_v27 }
  0x9c   :  { %4414 = vmatprep.subr.msk.bf16.mxu0 %vm3557_vm1, %v4643_v37  ;;  %v1969_v37 = vrot.slane %v4998_v52, %v4944_v17 }
  0x9d   :  { %3637 = vmatpush1.bf16.msra.mxu0 %v3559_v42  ;;  %v1883_v48 = vpop.permute.xlu1 %1882  ;;  %v1881_v49 = vpop.permute.xlu0 %1880  ;;  %v4645_v50 = vpack.c.bf16 %v2769_v44, %v2769_v44  ;;  %v4644_v51 = vpack.c.bf16 %v2768_v45, %v2768_v45  ;;  %v5062_v45 = vld [vmem:[#allocation3 + $0x60] sm:$0xff] }
  0x9e   :  { %v1948_v59 = vsel %vm1926_vm2, %v1881_v49, %v1883_v48 }
  0x9f   :  { %83 = vrot.lane.b32.xlu1 %v4899_v10, %s4759_s0  ;;  %81 = vrot.lane.b32.xlu0 %v4889_v7, %s4759_s0  ;;  %v3565_v53 = vsel %vm3557_vm1, %v4644_v51, 0  ;;  %v2087_v13 = vmul.f32 %v1973_v57, %v1948_v59  ;;  %v1633_v59 = vrot.slane %v5056_v41, %v4953_v21 }
  0xa0   :  { %4416 = vmatprep.subr.msk.bf16.mxu1 %vm3557_vm1, %v4645_v50 }
  0xa1   :  { %3678 = vmatpush1.bf16.msra.mxu1 %v3565_v53  ;;  %v5009_v55 = vpop.permute.xlu1 %1886  ;;  %v1885_v56 = vpop.permute.xlu0 %1884 }
  0xa2   :  { %v1947_v24 = vsel %vm1926_vm2, %v1883_v48, %v1885_v56  ;;  %v1946_v29 = vsel %vm1926_vm2, %v1885_v56, %v5009_v55 }
  0xa3   :  { %420 = vrot.lane.b32.xlu1 %v4891_v8, %s4766_s6  ;;  %418 = vrot.lane.b32.xlu0 %v4818_v3, %s4766_s6  ;;  %v2088_v38 = vmul.f32 %v1977_v60, %v1947_v24  ;;  %v2089_v42 = vmul.f32 %v1981_v63, %v1946_v29 }
  0xa5   :  { %v2223_v61 = vpop.permute.xlu1 %2222  ;;  %v2221_v62 = vpop.permute.xlu0 %2220 }
  0xa6   :  { %v2288_v5 = vsel %vm2266_vm3, %v2221_v62, %v2223_v61 }
  0xa7   :  { %v2427_v25 = vmul.f32 %v2313_v58, %v2288_v5  ;;  %424 = vrot.lane.b32.xlu1 %v4899_v10, %s4766_s6  ;;  %422 = vrot.lane.b32.xlu0 %v4889_v7, %s4766_s6  ;;  %v1637_v5 = vrot.slane %v5056_v41, %v4970_v26 }
  0xa9   :  { %v5045_v32 = vpop.permute.xlu1 %2226  ;;  %v2225_v33 = vpop.permute.xlu0 %2224  ;;  %v4619_v34 = vpack.c.bf16 %v2427_v25, %v2087_v13 }
  0xaa   :  { %v2286_v39 = vsel %vm2266_vm3, %v2225_v33, %v5045_v32  ;;  %v2287_v40 = vsel %vm2266_vm3, %v2223_v61, %v2225_v33  ;;  %v1629_v33 = vrot.slane %v5056_v41, %v4944_v17 }
  0xab   :  { %v2428_v43 = vmul.f32 %v2317_v11, %v2287_v40  ;;  %v2429_v44 = vmul.f32 %v2321_v12, %v2286_v39  ;;  %2578 = vrot.lane.b32.xlu1 %v5041_v30, %s4760_s27  ;;  %2576 = vrot.lane.b32.xlu0 %v5043_v31, %s4760_s27  ;;  %v1641_v11 = vrot.slane %v5056_v41, %v4958_v23  ;;  %v824_v40 = vld [vmem:[#allocation6 + $0x2] ss:$8 sm:$0xf] }
  0xac   :  { %3638 = vmatprep.subr.bf16.mxu0 %v4619_v34 }
  0xad   :  { %v5066_v47 = vpop.permute.xlu1 %2218  ;;  %v5068_v48 = vpop.permute.xlu0 %1878  ;;  %v4621_v50 = vpack.c.bf16 %v2429_v44, %v2089_v42  ;;  %v4620_v51 = vpack.c.bf16 %v2428_v43, %v2088_v38  ;;  %v825_v42 = vld [vmem:[#allocation6 + $0x2] ss:$8 sm:$0xf0]  ;;  %v1164_v43 = vld [vmem:[#allocation6 + $0x3] ss:$8 sm:$0xf] }
  0xae   :  { %v2289_v53 = vsel %vm2266_vm3, %v5066_v47, %v2221_v62  ;;  %v1949_v56 = vsel %vm1926_vm2, %v5068_v48, %v1881_v49  ;;  %v1165_v44 = vld [vmem:[#allocation6 + $0x3] ss:$8 sm:$0xf0] }
  0xaf   :  { %v2426_v57 = vmul.f32 %v2309_v36, %v2289_v53  ;;  %v2086_v58 = vmul.f32 %v1969_v37, %v1949_v56  ;;  %2582 = vrot.lane.b32.xlu1 %v5062_v45, %s4760_s27  ;;  %2580 = vrot.lane.b32.xlu0 %v5064_v46, %s4760_s27  ;;  %v5127_v53 = vor.u32 %v1165_v44, %v1164_v43 }
  0xb0   :  { %3679 = vmatprep.subr.bf16.mxu1 %v4621_v50 }
  0xb1   :  { %3680 = vmatpush1.bf16.msra.mxu1 %v4620_v51  ;;  %v1543_v60 = vpop.permute.xlu1 %1542  ;;  %v1541_v61 = vpop.permute.xlu0 %1540  ;;  %v4618_v62 = vpack.c.bf16 %v2426_v57, %v2086_v58  ;;  %v5121_v51 = vor.u32 %v825_v42, %v824_v40 }
  0xb2   :  { %v1608_v49 = vsel %vm1586_vm4, %v1541_v61, %v1543_v60 }
  0xb3   :  { %v1747_v63 = vmul.f32 %v1633_v59, %v1608_v49  ;;  %1898 = vrot.lane.b32.xlu1 %v5041_v30, %s4761_s3  ;;  %1896 = vrot.lane.b32.xlu0 %v5043_v31, %s4761_s3  ;;  %v845_v58 = vrot.slane %v5121_v51, %v4953_v21  ;;  %v145_v49 = vld [vmem:[#allocation6] ss:$8 sm:$0xf0] }
  0xb4   :  { %3639 = vmatpush1.bf16.msra.mxu0 %v4618_v62  ;;  %v144_v62 = vld [vmem:[#allocation6] ss:$8 sm:$0xf] }
  0xb5   :  { %v5093_v12 = vpop.permute.xlu1 %1546  ;;  %v1545_v13 = vpop.permute.xlu0 %1544  ;;  %v4595_v24 = vpack.c.bf16 %v1747_v63, %v4808_v2  ;;  %v853_v63 = vrot.slane %v5121_v51, %v4958_v23 }
  0xb6   :  { %v1606_v25 = vsel %vm1586_vm4, %v1545_v13, %v5093_v12  ;;  %v1607_v27 = vsel %vm1586_vm4, %v1543_v60, %v1545_v13 }
  0xb7   :  { %v1748_v28 = vmul.f32 %v1637_v5, %v1607_v27  ;;  %v1749_v29 = vmul.f32 %v1641_v11, %v1606_v25  ;;  %1902 = vrot.lane.b32.xlu1 %v5062_v45, %s4761_s3  ;;  %1900 = vrot.lane.b32.xlu0 %v5064_v46, %s4761_s3  ;;  %v1189_v5 = vrot.slane %v5127_v53, %v4970_v26  ;;  %v484_v27 = vld [vmem:[#allocation6 + $0x1] ss:$8 sm:$0xf] }
  0xb8   :  { %3640 = vmatprep.subr.bf16.mxu0 %v4595_v24  ;;  %v1193_v25 = vrot.slane %v5127_v53, %v4958_v23 }
  0xb9   :  { %v5107_v2 = vpop.permute.xlu1 %750  ;;  %v5109_v34 = vpop.permute.xlu0 %1538  ;;  %v4597_v36 = vpack.c.bf16 %v1749_v29, %v4820_v4  ;;  %v4596_v37 = vpack.c.bf16 %v1748_v28, %v4800_v0  ;;  %v485_v28 = vld [vmem:[#allocation6 + $0x1] ss:$8 sm:$0xf0] }
  0xba   :  { %v1609_v38 = vsel %vm1586_vm4, %v5109_v34, %v1541_v61 }
  0xbb   :  { %v1746_v39 = vmul.f32 %v1629_v33, %v1609_v38  ;;  %2238 = vrot.lane.b32.xlu1 %v5041_v30, %s4762_s28  ;;  %2236 = vrot.lane.b32.xlu0 %v5043_v31, %s4762_s28  ;;  %v841_v38 = vrot.slane %v5121_v51, %v4944_v17 }
  0xbc   :  { %3681 = vmatprep.subr.bf16.mxu1 %v4597_v36  ;;  %v5161_v36 = vor.u32 %v145_v49, %v144_v62 }
  0xbd   :  { %3682 = vmatpush1.bf16.msra.mxu1 %v4596_v37  ;;  %v755_v4 = vpop.permute.xlu1 %754  ;;  %v753_v50 = vpop.permute.xlu0 %752  ;;  %v4594_v0 = vpack.c.bf16 %v1746_v39, %v4802_v1  ;;  %v1185_v1 = vrot.slane %v5127_v53, %v4953_v21  ;;  %v849_v37 = vrot.slane %v5121_v51, %v4970_v26 }
  0xbe   :  { %v821_v59 = vsel %vm798_vm5, %v5107_v2, %v753_v50  ;;  %v820_v43 = vsel %vm798_vm5, %v753_v50, %v755_v4 }
  0xbf   :  { %2242 = vrot.lane.b32.xlu1 %v5062_v45, %s4762_s28  ;;  %2240 = vrot.lane.b32.xlu0 %v5064_v46, %s4762_s28  ;;  %v959_v13 = vmul.f32 %v845_v58, %v821_v59  ;;  %v5178_v58 = vor.u32 %v485_v28, %v484_v27  ;;  %v960_v50 = vmul.f32 %v849_v37, %v820_v43 }
  0xc0   :  { %3641 = vmatpush1.bf16.msra.mxu0 %v4594_v0  ;;  %v1181_v0 = vrot.slane %v5127_v53, %v4944_v17  ;;  %v141_v43 = vsel %vm119_vm7, %v4955_v22, %v4933_v14 }
  0xc1   :  { %v1091_v56 = vpop.permute.xlu1 %1090  ;;  %v5130_v57 = vpop.permute.xlu0 %756 }
  0xc2   :  { %v819_v29 = vsel %vm798_vm5, %v755_v4, %v5130_v57 }
  0xc3   :  { %1558 = vrot.lane.b32.xlu1 %v5041_v30, %s4763_s29  ;;  %1556 = vrot.lane.b32.xlu0 %v5043_v31, %s4763_s29 }
  0xc5   :  { %v1095_v60 = vpop.permute.xlu1 %1094  ;;  %v1093_v61 = vpop.permute.xlu0 %1092 }
  0xc6   :  { %v1161_v11 = vsel %vm1138_vm6, %v1091_v56, %v1093_v61  ;;  %v1160_v33 = vsel %vm1138_vm6, %v1093_v61, %v1095_v60 }
  0xc7   :  { %v1299_v24 = vmul.f32 %v1185_v1, %v1161_v11  ;;  %1562 = vrot.lane.b32.xlu1 %v5062_v45, %s4763_s29  ;;  %1560 = vrot.lane.b32.xlu0 %v5064_v46, %s4763_s29  ;;  %v961_v1 = vmul.f32 %v853_v63, %v819_v29  ;;  %v1300_v59 = vmul.f32 %v1189_v5, %v1160_v33 }
  0xc8   :  { %v165_v63 = vrot.slane %v5161_v36, %v4953_v21  ;;  %v505_v11 = vrot.slane %v5178_v58, %v4953_v21  ;;  %v173_v33 = vrot.slane %v5161_v36, %v4958_v23 }
  0xc9   :  { %v5167_v39 = vpop.permute.xlu1 %796  ;;  %v5169_v40 = vpop.permute.xlu0 %1096  ;;  %v4571_v42 = vpack.c.bf16 %v1299_v24, %v959_v13  ;;  %v4572_v24 = vpack.c.bf16 %v1300_v59, %v960_v50  ;;  %v5232_v59 = vsub.s32 4, %v4937_v16  ;;  %v501_v50 = vrot.slane %v5178_v58, %v4944_v17 }
  0xca   :  { %v1159_v44 = vsel %vm1138_vm6, %v1095_v60, %v5169_v40  ;;  %v822_v4 = vsel %vm798_vm5, %v5167_v39, %v5107_v2 }
  0xcb   :  { %v1301_v61 = vmul.f32 %v1193_v25, %v1159_v44  ;;  %768 = vrot.lane.b32.xlu1 %v5043_v31, %s4764_s30  ;;  %766 = vrot.lane.b32.xlu0 %v4897_v9, %s4764_s30  ;;  %v958_v2 = vmul.f32 %v841_v38, %v822_v4  ;;  %v142_v25 = vsel %vm119_vm7, %v4935_v15, %v4955_v22 }
  0xcc   :  { %3642 = vmatprep.subr.bf16.mxu0 %v4571_v42  ;;  %v509_v38 = vrot.slane %v5178_v58, %v4970_v26  ;;  %v513_v42 = vrot.slane %v5178_v58, %v4958_v23  ;;  %v279_v44 = vmul.f32 %v165_v63, %v142_v25 }
  0xcd   :  { %v5189_v60 = vpop.permute.xlu1 %75  ;;  %v5191_v62 = vpop.permute.xlu0 %1136  ;;  %v4573_v49 = vpack.c.bf16 %v1301_v61, %v961_v1 }
  0xce   :  { %v1162_v5 = vsel %vm1138_vm6, %v5191_v62, %v1091_v56  ;;  %v169_v56 = vrot.slane %v5161_v36, %v4970_v26  ;;  %v140_v1 = vsel %vm119_vm7, %v4933_v14, %v5189_v60  ;;  %v161_v14 = vrot.slane %v5161_v36, %v4944_v17 }
  0xcf   :  { %v1298_v13 = vmul.f32 %v1181_v0, %v1162_v5  ;;  %772 = vrot.lane.b32.xlu1 %v5064_v46, %s4764_s30  ;;  %770 = vrot.lane.b32.xlu0 %v5041_v30, %s4764_s30 }
  0xd0   :  { %3683 = vmatprep.subr.bf16.mxu1 %v4573_v49  ;;  %v280_v49 = vmul.f32 %v169_v56, %v141_v43  ;;  %v5269_v43 = vsub.s32 7, %v4937_v16 }
  0xd1   :  { %3684 = vmatpush1.bf16.msra.mxu1 %v4572_v24  ;;  %v413_v27 = vpop.permute.xlu1 %412  ;;  %v411_v28 = vpop.permute.xlu0 %410  ;;  %v4570_v29 = vpack.c.bf16 %v1298_v13, %v958_v2  ;;  %v281_v2 = vmul.f32 %v173_v33, %v140_v1 }
  0xd2   :  { %v481_v37 = vsel %vm458_vm8, %v411_v28, %v413_v27 }
  0xd3   :  { %v619_v0 = vmul.f32 %v505_v11, %v481_v37  ;;  %1108 = vrot.lane.b32.xlu1 %v5043_v31, %s4765_s5  ;;  %1106 = vrot.lane.b32.xlu0 %v4897_v9, %s4765_s5  ;;  %v5246_v11 = vsub.s32 5, %v4937_v16  ;;  %v5257_v37 = vsub.s32 6, %v4937_v16 }
  0xd4   :  { %3643 = vmatpush1.bf16.msra.mxu0 %v4570_v29 }
  0xd5   :  { %v5234_v61 = vpop.permute.xlu1 %416  ;;  %v415_v22 = vpop.permute.xlu0 %414  ;;  %v4547_v4 = vpack.c.bf16 %v619_v0, %v279_v44 }
  0xd6   :  { %v479_v63 = vsel %vm458_vm8, %v415_v22, %v5234_v61  ;;  %v480_v5 = vsel %vm458_vm8, %v413_v27, %v415_v22 }
  0xd7   :  { %v620_v13 = vmul.f32 %v509_v38, %v480_v5  ;;  %v621_v24 = vmul.f32 %v513_v42, %v479_v63  ;;  %1112 = vrot.lane.b32.xlu1 %v5064_v46, %s4765_s5  ;;  %1110 = vrot.lane.b32.xlu0 %v5041_v30, %s4765_s5  ;;  %v2665_v42 = vrot.slane %v4946_v18, %v5232_v59 }
  0xd8   :  { %3644 = vmatprep.subr.bf16.mxu0 %v4547_v4  ;;  %v2677_v5 = vrot.slane %v4946_v18, %v5269_v43 }
  0xd9   :  { %v5252_v25 = vpop.permute.xlu1 %456  ;;  %v5254_v56 = vpop.permute.xlu0 %115  ;;  %v4549_v27 = vpack.c.bf16 %v621_v24, %v281_v2  ;;  %v4548_v29 = vpack.c.bf16 %v620_v13, %v280_v49 }
  0xda   :  { %v482_v33 = vsel %vm458_vm8, %v5252_v25, %v411_v28  ;;  %v143_v38 = vsel %vm119_vm7, %v5254_v56, %v4935_v15  ;;  %v2669_v28 = vrot.slane %v4946_v18, %v5246_v11 }
  0xdb   :  { %v618_v44 = vmul.f32 %v501_v50, %v482_v33  ;;  %v278_v0 = vmul.f32 %v161_v14, %v143_v38  ;;  %87 = vrot.lane.b32.xlu1 %v5043_v31, %s4759_s0  ;;  %85 = vrot.lane.b32.xlu0 %v4897_v9, %s4759_s0  ;;  %v2673_v50 = vrot.slane %v4946_v18, %v5257_v37  ;;  %v5293_v14 = vld [vmem:[%s6434_s1] sm:$0xf] }
  0xdc   :  { %3685 = vmatprep.subr.bf16.mxu1 %v4549_v27 }
  0xdd   :  { %3686 = vmatpush1.bf16.msra.mxu1 %v4548_v29  ;;  %v2571_v15 = vpop.permute.xlu1 %2570  ;;  %v2569_v1 = vpop.permute.xlu0 %2568  ;;  %v4546_v22 = vpack.c.bf16 %v618_v44, %v278_v0 }
  0xde   :  { %v2624_v16 = vsel %vm2606_vm0, %v2569_v1, %v2571_v15  ;;  %v2625_v4 = vsel %vm2606_vm0, %v4985_v35, %v2569_v1  ;;  %v5322_v1 = vld [vmem:[#allocation3 + $0x68] sm:$0xff] }
  0xdf   :  { %v2770_v49 = vmul.f32 %v2665_v42, %v2625_v4  ;;  %v2771_v63 = vmul.f32 %v2669_v28, %v2624_v16  ;;  %91 = vrot.lane.b32.xlu1 %v5064_v46, %s4759_s0  ;;  %89 = vrot.lane.b32.xlu0 %v5041_v30, %s4759_s0  ;;  %v1985_v4 = vrot.slane %v4998_v52, %v5232_v59 }
  0xe0   :  { %3645 = vmatpush1.bf16.msra.mxu0 %v4546_v22  ;;  %4417 = vmatmul.mubr.msk.bf16.vlgmr.msra.gmra.mxu1 %vm3553_vm9, %v5293_v14 }
  0xe1   :  { %v4646_v35 = vpack.c.bf16 %v2770_v49, %v2770_v49  ;;  %v4647_v2 = vpack.c.bf16 %v2771_v63, %v2771_v63  ;;  %v5297_v13 = vpop.permute.xlu1 %2574  ;;  %v2573_v24 = vpop.permute.xlu0 %2572  ;;  %3785 = vmatprep.mubr.bf16.mxu1 %v6438_v6 }
  0xe2   :  { %v2622_v18 = vsel %vm2606_vm0, %v2573_v24, %v5297_v13  ;;  %v2623_v27 = vsel %vm2606_vm0, %v2571_v15, %v2573_v24  ;;  %v5320_v15 = vld [vmem:[#allocation3 + $0x70] sm:$0xff]  ;;  %v1993_v24 = vrot.slane %v4998_v52, %v5257_v37 }
  0xe3   :  { %v2772_v29 = vmul.f32 %v2673_v50, %v2623_v27  ;;  %v2773_v33 = vmul.f32 %v2677_v5, %v2622_v18  ;;  %428 = vrot.lane.b32.xlu1 %v5043_v31, %s4766_s6  ;;  %426 = vrot.lane.b32.xlu0 %v4897_v9, %s4766_s6  ;;  %v3571_v38 = vsel %vm3557_vm1, %v4646_v35, 0  ;;  %v1989_v50 = vrot.slane %v4998_v52, %v5246_v11  ;;  %v5343_v35 = vld [vmem:[#allocation3 + $0x80] sm:$0xff] }
  0xe4   :  { %4418 = vmatprep.subr.msk.bf16.mxu0 %vm3557_vm1, %v4647_v2  ;;  %4415 = vmatmul.mubr.msk.bf16.vlgmr.msra.gmra.mxu0 %vm3553_vm9, %v5293_v14  ;;  %v2329_v5 = vrot.slane %v5005_v54, %v5246_v11  ;;  %v5345_v2 = vld [vmem:[#allocation3 + $0x78] sm:$0xff]  ;;  %v1997_v18 = vrot.slane %v4998_v52, %v5269_v43 }
  0xe5   :  { %v4648_v42 = vpack.c.bf16 %v2772_v29, %v2772_v29  ;;  %v4649_v44 = vpack.c.bf16 %v2773_v33, %v2773_v33  ;;  %3719 = vmatpush1.bf16.msra.mxu0 %v3571_v38  ;;  %v1891_v0 = vpop.permute.xlu1 %1890  ;;  %v1889_v28 = vpop.permute.xlu0 %1888  ;;  %3744 = vmatprep.mubr.bf16.mxu0 %v6438_v6  ;;  %v2333_v29 = vrot.slane %v5005_v54, %v5257_v37 }
  0xe6   :  { %v1944_v49 = vsel %vm1926_vm2, %v1889_v28, %v1891_v0  ;;  %v1945_v63 = vsel %vm1926_vm2, %v5009_v55, %v1889_v28  ;;  %v2337_v33 = vrot.slane %v5005_v54, %v5269_v43 }
  0xe7   :  { %432 = vrot.lane.b32.xlu1 %v5064_v46, %s4766_s6  ;;  %430 = vrot.lane.b32.xlu0 %v5041_v30, %s4766_s6  ;;  %v3577_v9 = vsel %vm3557_vm1, %v4648_v42, 0  ;;  %v2325_v30 = vrot.slane %v5005_v54, %v5232_v59  ;;  %v2090_v38 = vmul.f32 %v1985_v4, %v1945_v63  ;;  %v2091_v42 = vmul.f32 %v1989_v50, %v1944_v49 }
  0xe8   :  { %4420 = vmatprep.subr.msk.bf16.mxu1 %vm3557_vm1, %v4649_v44 }
  0xe9   :  { %3760 = vmatpush1.bf16.msra.mxu1 %v3577_v9  ;;  %v5324_v22 = vpop.permute.xlu1 %1894  ;;  %v1893_v16 = vpop.permute.xlu0 %1892 }
  0xea   :  { %v1943_v52 = vsel %vm1926_vm2, %v1891_v0, %v1893_v16  ;;  %v1942_v54 = vsel %vm1926_vm2, %v1893_v16, %v5324_v22  ;;  %v1645_v0 = vrot.slane %v5056_v41, %v5232_v59 }
  0xeb   :  { %2586 = vrot.lane.b32.xlu1 %v5320_v15, %s4760_s27  ;;  %2584 = vrot.lane.b32.xlu0 %v5322_v1, %s4760_s27  ;;  %v2093_v16 = vmul.f32 %v1997_v18, %v1942_v54 }
  0xed   :  { %v2231_v55 = vpop.permute.xlu1 %2230  ;;  %v2229_v27 = vpop.permute.xlu0 %2228 }
  0xee   :  { %v2284_v44 = vsel %vm2266_vm3, %v2229_v27, %v2231_v55  ;;  %v2285_v28 = vsel %vm2266_vm3, %v5045_v32, %v2229_v27  ;;  %v1649_v27 = vrot.slane %v5056_v41, %v5246_v11 }
  0xef   :  { %v2430_v9 = vmul.f32 %v2325_v30, %v2285_v28  ;;  %v2431_v6 = vmul.f32 %v2329_v5, %v2284_v44  ;;  %2590 = vrot.lane.b32.xlu1 %v5343_v35, %s4760_s27  ;;  %2588 = vrot.lane.b32.xlu0 %v5345_v2, %s4760_s27  ;;  %v2092_v30 = vmul.f32 %v1993_v24, %v1943_v52 }
  0xf1   :  { %v4622_v4 = vpack.c.bf16 %v2430_v9, %v2090_v38  ;;  %v5369_v50 = vpop.permute.xlu1 %2234  ;;  %v2233_v49 = vpop.permute.xlu0 %2232  ;;  %v4623_v32 = vpack.c.bf16 %v2431_v6, %v2091_v42  ;;  %v1657_v9 = vrot.slane %v5056_v41, %v5269_v43 }
  0xf2   :  { %v2282_v63 = vsel %vm2266_vm3, %v2233_v49, %v5369_v50  ;;  %v2283_v5 = vsel %vm2266_vm3, %v2231_v55, %v2233_v49 }
  0xf3   :  { %v2432_v38 = vmul.f32 %v2333_v29, %v2283_v5  ;;  %v2433_v44 = vmul.f32 %v2337_v33, %v2282_v63  ;;  %1906 = vrot.lane.b32.xlu1 %v5320_v15, %s4761_s3  ;;  %1904 = vrot.lane.b32.xlu0 %v5322_v1, %s4761_s3  ;;  %v1653_v29 = vrot.slane %v5056_v41, %v5257_v37 }
  0xf4   :  { %3720 = vmatprep.subr.bf16.mxu0 %v4623_v32 }
  0xf5   :  { %v4624_v6 = vpack.c.bf16 %v2432_v38, %v2092_v30  ;;  %3721 = vmatpush1.bf16.msra.mxu0 %v4622_v4  ;;  %v1551_v24 = vpop.permute.xlu1 %1550  ;;  %v1549_v42 = vpop.permute.xlu0 %1548  ;;  %v4625_v28 = vpack.c.bf16 %v2433_v44, %v2093_v16  ;;  %v857_v38 = vrot.slane %v5121_v51, %v5232_v59 }
  0xf6   :  { %v1604_v55 = vsel %vm1586_vm4, %v1549_v42, %v1551_v24  ;;  %v1605_v18 = vsel %vm1586_vm4, %v5093_v12, %v1549_v42  ;;  %v865_v42 = vrot.slane %v5121_v51, %v5257_v37 }
  0xf7   :  { %v1750_v33 = vmul.f32 %v1645_v0, %v1605_v18  ;;  %v1751_v52 = vmul.f32 %v1649_v27, %v1604_v55  ;;  %1910 = vrot.lane.b32.xlu1 %v5343_v35, %s4761_s3  ;;  %1908 = vrot.lane.b32.xlu0 %v5345_v2, %s4761_s3 }
  0xf8   :  { %3761 = vmatprep.subr.bf16.mxu1 %v4625_v28  ;;  %v869_v28 = vrot.slane %v5121_v51, %v5269_v43 }
  0xf9   :  { %v4598_v54 = vpack.c.bf16 %v1750_v33, %v4818_v3  ;;  %3762 = vmatpush1.bf16.msra.mxu1 %v4624_v6  ;;  %v5398_v4 = vpop.permute.xlu1 %1554  ;;  %v1553_v12 = vpop.permute.xlu0 %1552  ;;  %v4599_v49 = vpack.c.bf16 %v1751_v52, %v4891_v8 }
  0xfa   :  { %v1602_v32 = vsel %vm1586_vm4, %v1553_v12, %v5398_v4  ;;  %v1603_v0 = vsel %vm1586_vm4, %v1551_v24, %v1553_v12  ;;  %v1201_v24 = vrot.slane %v5127_v53, %v5246_v11 }
  0xfb   :  { %v1752_v30 = vmul.f32 %v1653_v29, %v1603_v0  ;;  %v1753_v63 = vmul.f32 %v1657_v9, %v1602_v32  ;;  %2246 = vrot.lane.b32.xlu1 %v5320_v15, %s4762_s28  ;;  %2244 = vrot.lane.b32.xlu0 %v5322_v1, %s4762_s28  ;;  %v1209_v29 = vrot.slane %v5127_v53, %v5269_v43 }
  0xfc   :  { %3722 = vmatprep.subr.bf16.mxu0 %v4599_v49 }
  0xfd   :  { %v4600_v3 = vpack.c.bf16 %v1752_v30, %v4889_v7  ;;  %3723 = vmatpush1.bf16.msra.mxu0 %v4598_v54  ;;  %v761_v8 = vpop.permute.xlu1 %760  ;;  %v759_v41 = vpop.permute.xlu0 %758  ;;  %v4601_v5 = vpack.c.bf16 %v1753_v63, %v4899_v10  ;;  %v861_v7 = vrot.slane %v5121_v51, %v5246_v11  ;;  %v1197_v10 = vrot.slane %v5127_v53, %v5232_v59 }
  0xfe   :  { %v817_v44 = vsel %vm798_vm5, %v759_v41, %v761_v8  ;;  %v818_v6 = vsel %vm798_vm5, %v5130_v57, %v759_v41  ;;  %v1205_v57 = vrot.slane %v5127_v53, %v5257_v37 }
  0xff   :  { %2250 = vrot.lane.b32.xlu1 %v5343_v35, %s4762_s28  ;;  %2248 = vrot.lane.b32.xlu0 %v5345_v2, %s4762_s28  ;;  %v962_v33 = vmul.f32 %v857_v38, %v818_v6  ;;  %v963_v52 = vmul.f32 %v861_v7, %v817_v44 }
 0x100   :  { %3763 = vmatprep.subr.bf16.mxu1 %v4601_v5 }
 0x101   :  { %3764 = vmatpush1.bf16.msra.mxu1 %v4600_v3  ;;  %v5416_v27 = vpop.permute.xlu1 %764  ;;  %v763_v16 = vpop.permute.xlu0 %762 }
 0x102   :  { %v816_v51 = vsel %vm798_vm5, %v761_v8, %v763_v16  ;;  %v815_v53 = vsel %vm798_vm5, %v763_v16, %v5416_v27 }
 0x103   :  { %1566 = vrot.lane.b32.xlu1 %v5320_v15, %s4763_s29  ;;  %1564 = vrot.lane.b32.xlu0 %v5322_v1, %s4763_s29  ;;  %v964_v63 = vmul.f32 %v865_v42, %v816_v51  ;;  %v965_v41 = vmul.f32 %v869_v28, %v815_v53  ;;  %v177_v42 = vrot.slane %v5161_v36, %v5232_v59 }
 0x104   :  { %v181_v28 = vrot.slane %v5161_v36, %v5246_v11 }
 0x105   :  { %v1101_v55 = vpop.permute.xlu1 %1100  ;;  %v1099_v18 = vpop.permute.xlu0 %1098 }
 0x106   :  { %v1157_v9 = vsel %vm1138_vm6, %v1099_v18, %v1101_v55  ;;  %v1158_v54 = vsel %vm1138_vm6, %v5169_v40, %v1099_v18  ;;  %v2636_v18 = vld [vmem:[#allocation6 + $0x100] ss:$8 sm:$0xf] }
 0x107   :  { %v1302_v12 = vmul.f32 %v1197_v10, %v1158_v54  ;;  %v1303_v49 = vmul.f32 %v1201_v24, %v1157_v9  ;;  %1570 = vrot.lane.b32.xlu1 %v5343_v35, %s4763_s29  ;;  %1568 = vrot.lane.b32.xlu0 %v5345_v2, %s4763_s29  ;;  %v185_v9 = vrot.slane %v5161_v36, %v5257_v37 }
 0x108   :  { %v189_v54 = vrot.slane %v5161_v36, %v5269_v43 }
 0x109   :  { %v4574_v32 = vpack.c.bf16 %v1302_v12, %v962_v33  ;;  %v5457_v0 = vpop.permute.xlu1 %1104  ;;  %v1103_v30 = vpop.permute.xlu0 %1102  ;;  %v4575_v40 = vpack.c.bf16 %v1303_v49, %v963_v52  ;;  %v521_v52 = vrot.slane %v5178_v58, %v5246_v11  ;;  %v529_v49 = vrot.slane %v5178_v58, %v5269_v43 }
 0x10a   :  { %v1155_v3 = vsel %vm1138_vm6, %v1103_v30, %v5457_v0  ;;  %v1156_v8 = vsel %vm1138_vm6, %v1101_v55, %v1103_v30  ;;  %v517_v55 = vrot.slane %v5178_v58, %v5232_v59 }
 0x10b   :  { %v1304_v5 = vmul.f32 %v1205_v57, %v1156_v8  ;;  %v1305_v38 = vmul.f32 %v1209_v29, %v1155_v3  ;;  %776 = vrot.lane.b32.xlu1 %v5322_v1, %s4764_s30  ;;  %774 = vrot.lane.b32.xlu0 %v5062_v45, %s4764_s30  ;;  %v2637_v57 = vld [vmem:[#allocation6 + $0x100] ss:$8 sm:$0xf0] }
 0x10c   :  { %3724 = vmatprep.subr.bf16.mxu0 %v4575_v40  ;;  %v5499_v53 = vor.u32 %v2637_v57, %v2636_v18 }
 0x10d   :  { %v4576_v16 = vpack.c.bf16 %v1304_v5, %v964_v63  ;;  %3725 = vmatpush1.bf16.msra.mxu0 %v4574_v32  ;;  %v80_v7 = vpop.permute.xlu1 %79  ;;  %v78_v10 = vpop.permute.xlu0 %77  ;;  %v4577_v44 = vpack.c.bf16 %v1305_v38, %v965_v41 }
 0x10e   :  { %v138_v29 = vsel %vm119_vm7, %v78_v10, %v80_v7  ;;  %v139_v33 = vsel %vm119_vm7, %v5189_v60, %v78_v10  ;;  %v525_v60 = vrot.slane %v5178_v58, %v5257_v37 }
 0x10f   :  { %780 = vrot.lane.b32.xlu1 %v5345_v2, %s4764_s30  ;;  %778 = vrot.lane.b32.xlu0 %v5320_v15, %s4764_s30  ;;  %v282_v32 = vmul.f32 %v177_v42, %v139_v33  ;;  %v283_v30 = vmul.f32 %v181_v28, %v138_v29  ;;  %v2685_v42 = vrot.slane %v5499_v53, %v4953_v21 }
 0x110   :  { %3765 = vmatprep.subr.bf16.mxu1 %v4577_v44 }
 0x111   :  { %3766 = vmatpush1.bf16.msra.mxu1 %v4576_v16  ;;  %v5472_v6 = vpop.permute.xlu1 %83  ;;  %v82_v24 = vpop.permute.xlu0 %81  ;;  %v2681_v16 = vrot.slane %v5499_v53, %v4944_v17 }
 0x112   :  { %v137_v36 = vsel %vm119_vm7, %v80_v7, %v82_v24  ;;  %v136_v58 = vsel %vm119_vm7, %v82_v24, %v5472_v6 }
 0x113   :  { %1116 = vrot.lane.b32.xlu1 %v5322_v1, %s4765_s5  ;;  %1114 = vrot.lane.b32.xlu0 %v5062_v45, %s4765_s5  ;;  %v284_v7 = vmul.f32 %v185_v9, %v137_v36  ;;  %v285_v24 = vmul.f32 %v189_v54, %v136_v58  ;;  %v2689_v54 = vrot.slane %v5499_v53, %v4970_v26  ;;  %v2296_v58 = vld [vmem:[#allocation6 + $0x47] ss:$8 sm:$0xf] }
 0x115   :  { %v421_v51 = vpop.permute.xlu1 %420  ;;  %v419_v12 = vpop.permute.xlu0 %418 }
 0x116   :  { %v477_v40 = vsel %vm458_vm8, %v419_v12, %v421_v51  ;;  %v478_v63 = vsel %vm458_vm8, %v5234_v61, %v419_v12 }
 0x117   :  { %v622_v3 = vmul.f32 %v517_v55, %v478_v63  ;;  %v623_v8 = vmul.f32 %v521_v52, %v477_v40  ;;  %1120 = vrot.lane.b32.xlu1 %v5345_v2, %s4765_s5  ;;  %1118 = vrot.lane.b32.xlu0 %v5320_v15, %s4765_s5  ;;  %v1956_v40 = vld [vmem:[#allocation6 + $0x46] ss:$8 sm:$0xf]  ;;  %v6440_v63 = vmov 0  }
 0x119   :  { %v4550_v41 = vpack.c.bf16 %v622_v3, %v282_v32  ;;  %v5515_v5 = vpop.permute.xlu1 %424  ;;  %v423_v38 = vpop.permute.xlu0 %422  ;;  %v4551_v61 = vpack.c.bf16 %v623_v8, %v283_v30  ;;  %v1957_v8 = vld [vmem:[#allocation6 + $0x46] ss:$8 sm:$0xf0] }
 0x11a   :  { %v475_v10 = vsel %vm458_vm8, %v423_v38, %v5515_v5  ;;  %v476_v44 = vsel %vm458_vm8, %v421_v51, %v423_v38 }
 0x11b   :  { %v624_v28 = vmul.f32 %v525_v60, %v476_v44  ;;  %v625_v55 = vmul.f32 %v529_v49, %v475_v10  ;;  %95 = vrot.lane.b32.xlu1 %v5322_v1, %s4759_s0  ;;  %93 = vrot.lane.b32.xlu0 %v5062_v45, %s4759_s0  ;;  %v2693_v60 = vrot.slane %v5499_v53, %v4958_v23 }
 0x11c   :  { %3726 = vmatprep.subr.bf16.mxu0 %v4551_v61 }
 0x11d   :  { %v4552_v18 = vpack.c.bf16 %v624_v28, %v284_v7  ;;  %3727 = vmatpush1.bf16.msra.mxu0 %v4550_v41  ;;  %v2579_v57 = vpop.permute.xlu1 %2578  ;;  %v2577_v29 = vpop.permute.xlu0 %2576  ;;  %v4553_v33 = vpack.c.bf16 %v625_v55, %v285_v24  ;;  %v5562_v24 = vor.u32 %v1957_v8, %v1956_v40  ;;  %v5572_v55 = vld [vmem:[#allocation3 + $0x90] sm:$0xff] }
 0x11e   :  { %v2620_v52 = vsel %vm2606_vm0, %v2577_v29, %v2579_v57  ;;  %v2621_v9 = vsel %vm2606_vm0, %v5297_v13, %v2577_v29 }
 0x11f   :  { %v2774_v51 = vmul.f32 %v2681_v16, %v2621_v9  ;;  %v2775_v12 = vmul.f32 %v2685_v42, %v2620_v52  ;;  %99 = vrot.lane.b32.xlu1 %v5345_v2, %s4759_s0  ;;  %97 = vrot.lane.b32.xlu0 %v5320_v15, %s4759_s0  ;;  %v2297_v16 = vld [vmem:[#allocation6 + $0x47] ss:$8 sm:$0xf0]  ;;  %v2005_v52 = vrot.slane %v5562_v24, %v4953_v21  ;;  %v1616_v9 = vld [vmem:[#allocation6 + $0x45] ss:$8 sm:$0xf] }
 0x120   :  { %3767 = vmatprep.subr.bf16.mxu1 %v4553_v33  ;;  %4419 = vmatmul.mubr.msk.bf16.vlgmr.msra.gmra.mxu0 %vm3553_vm9, %v5293_v14  ;;  %v5564_v28 = vor.u32 %v2297_v16, %v2296_v58  ;;  %v2001_v33 = vrot.slane %v5562_v24, %v4944_v17  ;;  %v2013_v40 = vrot.slane %v5562_v24, %v4958_v23 }
 0x121   :  { %v4650_v49 = vpack.c.bf16 %v2774_v51, %v2774_v51  ;;  %v4651_v13 = vpack.c.bf16 %v2775_v12, %v2775_v12  ;;  %3768 = vmatpush1.bf16.msra.mxu1 %v4552_v18  ;;  %v5545_v32 = vpop.permute.xlu1 %2582  ;;  %v2581_v30 = vpop.permute.xlu0 %2580  ;;  %3826 = vmatprep.mubr.bf16.mxu0 %v6440_v63  ;;  %v5574_v18 = vld [vmem:[#allocation3 + $0x88] sm:$0xff] }
 0x122   :  { %v2618_v36 = vsel %vm2606_vm0, %v2581_v30, %v5545_v32  ;;  %v2619_v3 = vsel %vm2606_vm0, %v2579_v57, %v2581_v30  ;;  %v5599_v30 = vld [vmem:[#allocation3 + $0x98] sm:$0xff]  ;;  %v2353_v8 = vrot.slane %v5564_v28, %v4958_v23 }
 0x123   :  { %v2776_v41 = vmul.f32 %v2689_v54, %v2619_v3  ;;  %v2777_v38 = vmul.f32 %v2693_v60, %v2618_v36  ;;  %436 = vrot.lane.b32.xlu1 %v5322_v1, %s4766_s6  ;;  %434 = vrot.lane.b32.xlu0 %v5062_v45, %s4766_s6  ;;  %v3583_v61 = vsel %vm3557_vm1, %v4650_v49, 0  ;;  %v1617_v54 = vld [vmem:[#allocation6 + $0x45] ss:$8 sm:$0xf0]  ;;  %v2345_v60 = vrot.slane %v5564_v28, %v4953_v21 }
 0x124   :  { %4422 = vmatprep.subr.msk.bf16.mxu0 %vm3557_vm1, %v4651_v13  ;;  %4421 = vmatmul.mubr.msk.bf16.vlgmr.msra.gmra.mxu1 %vm3553_vm9, %v5293_v14  ;;  %v2009_v49 = vrot.slane %v5562_v24, %v4970_v26  ;;  %v5597_v13 = vld [vmem:[#allocation3 + $0xa0] sm:$0xff]  ;;  %v2349_v3 = vrot.slane %v5564_v28, %v4970_v26  ;;  %v5607_v58 = vor.u32 %v1617_v54, %v1616_v9 }
 0x125   :  { %v4652_v7 = vpack.c.bf16 %v2776_v41, %v2776_v41  ;;  %v4653_v10 = vpack.c.bf16 %v2777_v38, %v2777_v38  ;;  %3801 = vmatpush1.bf16.msra.mxu0 %v3583_v61  ;;  %v1899_v44 = vpop.permute.xlu1 %1898  ;;  %v1897_v42 = vpop.permute.xlu0 %1896  ;;  %3867 = vmatprep.mubr.bf16.mxu1 %v6440_v63 }
 0x126   :  { %v1940_v51 = vsel %vm1926_vm2, %v1897_v42, %v1899_v44  ;;  %v1941_v12 = vsel %vm1926_vm2, %v5324_v22, %v1897_v42 }
 0x127   :  { %440 = vrot.lane.b32.xlu1 %v5345_v2, %s4766_s6  ;;  %438 = vrot.lane.b32.xlu0 %v5320_v15, %s4766_s6  ;;  %v3589_v45 = vsel %vm3557_vm1, %v4652_v7, 0  ;;  %v2341_v15 = vrot.slane %v5564_v28, %v4944_v17  ;;  %v2094_v41 = vmul.f32 %v2001_v33, %v1941_v12  ;;  %v2095_v38 = vmul.f32 %v2005_v52, %v1940_v51 }
 0x128   :  { %4424 = vmatprep.subr.msk.bf16.mxu1 %vm3557_vm1, %v4653_v10  ;;  %v1665_v12 = vrot.slane %v5607_v58, %v4953_v21 }
 0x129   :  { %3842 = vmatpush1.bf16.msra.mxu1 %v3589_v45  ;;  %v5576_v57 = vpop.permute.xlu1 %1902  ;;  %v1901_v29 = vpop.permute.xlu0 %1900 }
 0x12a   :  { %v1939_v7 = vsel %vm1926_vm2, %v1899_v44, %v1901_v29  ;;  %v1938_v45 = vsel %vm1926_vm2, %v1901_v29, %v5576_v57  ;;  %v1661_v44 = vrot.slane %v5607_v58, %v4944_v17 }
 0x12b   :  { %2594 = vrot.lane.b32.xlu1 %v5572_v55, %s4760_s27  ;;  %2592 = vrot.lane.b32.xlu0 %v5574_v18, %s4760_s27  ;;  %v2097_v29 = vmul.f32 %v2013_v40, %v1938_v45 }
 0x12d   :  { %v2239_v22 = vpop.permute.xlu1 %2238  ;;  %v2237_v36 = vpop.permute.xlu0 %2236 }
 0x12e   :  { %v2280_v61 = vsel %vm2266_vm3, %v2237_v36, %v2239_v22  ;;  %v2281_v16 = vsel %vm2266_vm3, %v5369_v50, %v2237_v36 }
 0x12f   :  { %v2434_v10 = vmul.f32 %v2341_v15, %v2281_v16  ;;  %v2435_v42 = vmul.f32 %v2345_v60, %v2280_v61  ;;  %2598 = vrot.lane.b32.xlu1 %v5597_v13, %s4760_s27  ;;  %2596 = vrot.lane.b32.xlu0 %v5599_v30, %s4760_s27  ;;  %v2096_v15 = vmul.f32 %v2009_v49, %v1939_v7 }
 0x130   :  { %v1673_v7 = vrot.slane %v5607_v58, %v4958_v23 }
 0x131   :  { %v4626_v33 = vpack.c.bf16 %v2434_v10, %v2094_v41  ;;  %v5623_v52 = vpop.permute.xlu1 %2242  ;;  %v2241_v9 = vpop.permute.xlu0 %2240  ;;  %v4627_v50 = vpack.c.bf16 %v2435_v42, %v2095_v38  ;;  %v4681_v10 = vld [vmem:[#allocation3 + $0x40] sm:$0xff] }
 0x132   :  { %v2278_v54 = vsel %vm2266_vm3, %v2241_v9, %v5623_v52  ;;  %v2279_v51 = vsel %vm2266_vm3, %v2239_v22, %v2241_v9 }
 0x133   :  { %v2436_v60 = vmul.f32 %v2349_v3, %v2279_v51  ;;  %v2437_v36 = vmul.f32 %v2353_v8, %v2278_v54  ;;  %1914 = vrot.lane.b32.xlu1 %v5572_v55, %s4761_s3  ;;  %1912 = vrot.lane.b32.xlu0 %v5574_v18, %s4761_s3  ;;  %v1669_v3 = vrot.slane %v5607_v58, %v4970_v26 }
 0x134   :  { %3802 = vmatprep.subr.bf16.mxu0 %v4627_v50 }
 0x135   :  { %v4628_v49 = vpack.c.bf16 %v2436_v60, %v2096_v15  ;;  %3803 = vmatpush1.bf16.msra.mxu0 %v4626_v33  ;;  %v1559_v41 = vpop.permute.xlu1 %1558  ;;  %v1557_v38 = vpop.permute.xlu0 %1556  ;;  %v4629_v61 = vpack.c.bf16 %v2437_v36, %v2097_v29  ;;  %v829_v15 = vld [vmem:[#allocation6 + $0x42] ss:$8 sm:$0xf0]  ;;  %v1169_v29 = vld [vmem:[#allocation6 + $0x43] ss:$8 sm:$0xf0] }
 0x136   :  { %v1600_v22 = vsel %vm1586_vm4, %v1557_v38, %v1559_v41  ;;  %v1601_v40 = vsel %vm1586_vm4, %v5398_v4, %v1557_v38 }
 0x137   :  { %v1754_v8 = vmul.f32 %v1661_v44, %v1601_v40  ;;  %v1755_v16 = vmul.f32 %v1665_v12, %v1600_v22  ;;  %1918 = vrot.lane.b32.xlu1 %v5597_v13, %s4761_s3  ;;  %1916 = vrot.lane.b32.xlu0 %v5599_v30, %s4761_s3  ;;  %v828_v44 = vld [vmem:[#allocation6 + $0x42] ss:$8 sm:$0xf]  ;;  %v1168_v12 = vld [vmem:[#allocation6 + $0x43] ss:$8 sm:$0xf] }
 0x138   :  { %3843 = vmatprep.subr.bf16.mxu1 %v4629_v61  ;;  %v5664_v38 = vor.u32 %v829_v15, %v828_v44  ;;  %v5666_v61 = vor.u32 %v1169_v29, %v1168_v12 }
 0x139   :  { %v4602_v42 = vpack.c.bf16 %v1754_v8, %v4681_v10  ;;  %3844 = vmatpush1.bf16.msra.mxu1 %v4628_v49  ;;  %v5651_v45 = vpop.permute.xlu1 %1562  ;;  %v1561_v4 = vpop.permute.xlu0 %1560  ;;  %v4603_v33 = vpack.c.bf16 %v1755_v16, %v5043_v31  ;;  %v4682_v31 = vld [vmem:[#allocation3 + $0x50] sm:$0xff] }
 0x13a   :  { %v1598_v9 = vsel %vm1586_vm4, %v1561_v4, %v5651_v45  ;;  %v1599_v50 = vsel %vm1586_vm4, %v1559_v41, %v1561_v4  ;;  %v1213_v8 = vrot.slane %v5666_v61, %v4944_v17  ;;  %v1217_v10 = vrot.slane %v5666_v61, %v4953_v21 }
 0x13b   :  { %v1756_v54 = vmul.f32 %v1669_v3, %v1599_v50  ;;  %v1757_v51 = vmul.f32 %v1673_v7, %v1598_v9  ;;  %2254 = vrot.lane.b32.xlu1 %v5572_v55, %s4762_s28  ;;  %2252 = vrot.lane.b32.xlu0 %v5574_v18, %s4762_s28  ;;  %v873_v3 = vrot.slane %v5664_v38, %v4944_v17 }
 0x13c   :  { %3804 = vmatprep.subr.bf16.mxu0 %v4603_v33  ;;  %v885_v4 = vrot.slane %v5664_v38, %v4958_v23  ;;  %v1225_v50 = vrot.slane %v5666_v61, %v4958_v23 }
 0x13d   :  { %v4604_v60 = vpack.c.bf16 %v1756_v54, %v4682_v31  ;;  %3805 = vmatpush1.bf16.msra.mxu0 %v4602_v42  ;;  %v769_v36 = vpop.permute.xlu1 %768  ;;  %v767_v49 = vpop.permute.xlu0 %766  ;;  %v4605_v41 = vpack.c.bf16 %v1757_v51, %v5064_v46  ;;  %v877_v46 = vrot.slane %v5664_v38, %v4953_v21  ;;  %v881_v42 = vrot.slane %v5664_v38, %v4970_v26 }
 0x13e   :  { %v813_v16 = vsel %vm798_vm5, %v767_v49, %v769_v36  ;;  %v814_v7 = vsel %vm798_vm5, %v5416_v27, %v767_v49  ;;  %v1221_v27 = vrot.slane %v5666_v61, %v4970_v26 }
 0x13f   :  { %2258 = vrot.lane.b32.xlu1 %v5597_v13, %s4762_s28  ;;  %2256 = vrot.lane.b32.xlu0 %v5599_v30, %s4762_s28  ;;  %v966_v44 = vmul.f32 %v873_v3, %v814_v7  ;;  %v967_v15 = vmul.f32 %v877_v46, %v813_v16  ;;  %v148_v16 = vld [vmem:[#allocation6 + $0x40] ss:$8 sm:$0xf] }
 0x140   :  { %3845 = vmatprep.subr.bf16.mxu1 %v4605_v41  ;;  %v149_v7 = vld [vmem:[#allocation6 + $0x40] ss:$8 sm:$0xf0] }
 0x141   :  { %3846 = vmatpush1.bf16.msra.mxu1 %v4604_v60  ;;  %v5672_v22 = vpop.permute.xlu1 %772  ;;  %v771_v40 = vpop.permute.xlu0 %770 }
 0x142   :  { %v812_v12 = vsel %vm798_vm5, %v769_v36, %v771_v40  ;;  %v811_v60 = vsel %vm798_vm5, %v771_v40, %v5672_v22  ;;  %v488_v40 = vld [vmem:[#allocation6 + $0x41] ss:$8 sm:$0xf] }
 0x143   :  { %1574 = vrot.lane.b32.xlu1 %v5572_v55, %s4763_s29  ;;  %1572 = vrot.lane.b32.xlu0 %v5574_v18, %s4763_s29  ;;  %v968_v46 = vmul.f32 %v881_v42, %v812_v12  ;;  %v489_v42 = vld [vmem:[#allocation6 + $0x41] ss:$8 sm:$0xf0] }
 0x145   :  { %v1109_v33 = vpop.permute.xlu1 %1108  ;;  %v1107_v9 = vpop.permute.xlu0 %1106 }
 0x146   :  { %v1153_v54 = vsel %vm1138_vm6, %v1107_v9, %v1109_v33  ;;  %v1154_v51 = vsel %vm1138_vm6, %v5457_v0, %v1107_v9 }
 0x147   :  { %v1306_v29 = vmul.f32 %v1213_v8, %v1154_v51  ;;  %v1307_v31 = vmul.f32 %v1217_v10, %v1153_v54  ;;  %1578 = vrot.lane.b32.xlu1 %v5597_v13, %s4763_s29  ;;  %1576 = vrot.lane.b32.xlu0 %v5599_v30, %s4763_s29  ;;  %v969_v10 = vmul.f32 %v885_v4, %v811_v60 }
 0x149   :  { %v4578_v49 = vpack.c.bf16 %v1306_v29, %v966_v44  ;;  %v5713_v41 = vpop.permute.xlu1 %1112  ;;  %v1111_v3 = vpop.permute.xlu0 %1110  ;;  %v4579_v0 = vpack.c.bf16 %v1307_v31, %v967_v15  ;;  %v5726_v29 = vor.u32 %v489_v42, %v488_v40 }
 0x14a   :  { %v1151_v36 = vsel %vm1138_vm6, %v1111_v3, %v5713_v41  ;;  %v1152_v8 = vsel %vm1138_vm6, %v1109_v33, %v1111_v3  ;;  %v5724_v33 = vor.u32 %v149_v7, %v148_v16 }
 0x14b   :  { %v1308_v9 = vmul.f32 %v1221_v27, %v1152_v8  ;;  %v1309_v54 = vmul.f32 %v1225_v50, %v1151_v36  ;;  %784 = vrot.lane.b32.xlu1 %v5574_v18, %s4764_s30  ;;  %782 = vrot.lane.b32.xlu0 %v5343_v35, %s4764_s30  ;;  %v533_v60 = vrot.slane %v5726_v29, %v4944_v17 }
 0x14c   :  { %3806 = vmatprep.subr.bf16.mxu0 %v4579_v0  ;;  %v193_v50 = vrot.slane %v5724_v33, %v4944_v17  ;;  %v197_v31 = vrot.slane %v5724_v33, %v4953_v21  ;;  %v537_v0 = vrot.slane %v5726_v29, %v4953_v21  ;;  %v205_v36 = vrot.slane %v5724_v33, %v4958_v23 }
 0x14d   :  { %v4580_v44 = vpack.c.bf16 %v1308_v9, %v968_v46  ;;  %3807 = vmatpush1.bf16.msra.mxu0 %v4578_v49  ;;  %v88_v15 = vpop.permute.xlu1 %87  ;;  %v86_v51 = vpop.permute.xlu0 %85  ;;  %v4581_v12 = vpack.c.bf16 %v1309_v54, %v969_v10  ;;  %v201_v46 = vrot.slane %v5724_v33, %v4970_v26  ;;  %v545_v7 = vrot.slane %v5726_v29, %v4958_v23 }
 0x14e   :  { %v134_v49 = vsel %vm119_vm7, %v86_v51, %v88_v15  ;;  %v135_v3 = vsel %vm119_vm7, %v5472_v6, %v86_v51  ;;  %v541_v6 = vrot.slane %v5726_v29, %v4970_v26 }
 0x14f   :  { %788 = vrot.lane.b32.xlu1 %v5599_v30, %s4764_s30  ;;  %786 = vrot.lane.b32.xlu0 %v5572_v55, %s4764_s30  ;;  %v286_v10 = vmul.f32 %v193_v50, %v135_v3  ;;  %v287_v9 = vmul.f32 %v197_v31, %v134_v49 }
 0x150   :  { %3847 = vmatprep.subr.bf16.mxu1 %v4581_v12 }
 0x151   :  { %3848 = vmatpush1.bf16.msra.mxu1 %v4580_v44  ;;  %v5732_v4 = vpop.permute.xlu1 %91  ;;  %v90_v27 = vpop.permute.xlu0 %89 }
 0x152   :  { %v133_v42 = vsel %vm119_vm7, %v88_v15, %v90_v27  ;;  %v132_v12 = vsel %vm119_vm7, %v90_v27, %v5732_v4  ;;  %v2697_v15 = vrot.slane %v5499_v53, %v5232_v59 }
 0x153   :  { %1124 = vrot.lane.b32.xlu1 %v5574_v18, %s4765_s5  ;;  %1122 = vrot.lane.b32.xlu0 %v5343_v35, %s4765_s5  ;;  %v289_v27 = vmul.f32 %v205_v36, %v132_v12 }
 0x155   :  { %v429_v8 = vpop.permute.xlu1 %428  ;;  %v427_v16 = vpop.permute.xlu0 %426 }
 0x156   :  { %v473_v54 = vsel %vm458_vm8, %v427_v16, %v429_v8  ;;  %v474_v40 = vsel %vm458_vm8, %v5515_v5, %v427_v16  ;;  %v2701_v16 = vrot.slane %v5499_v53, %v5246_v11 }
 0x157   :  { %v626_v44 = vmul.f32 %v533_v60, %v474_v40  ;;  %v627_v51 = vmul.f32 %v537_v0, %v473_v54  ;;  %1128 = vrot.lane.b32.xlu1 %v5599_v30, %s4765_s5  ;;  %1126 = vrot.lane.b32.xlu0 %v5572_v55, %s4765_s5  ;;  %v288_v60 = vmul.f32 %v201_v46, %v133_v42 }
 0x159   :  { %v4554_v50 = vpack.c.bf16 %v626_v44, %v286_v10  ;;  %v5773_v31 = vpop.permute.xlu1 %432  ;;  %v431_v49 = vpop.permute.xlu0 %430  ;;  %v4555_v5 = vpack.c.bf16 %v627_v51, %v287_v9  ;;  %v2709_v51 = vrot.slane %v5499_v53, %v5269_v43 }
 0x15a   :  { %v471_v3 = vsel %vm458_vm8, %v431_v49, %v5773_v31  ;;  %v472_v0 = vsel %vm458_vm8, %v429_v8, %v431_v49 }
 0x15b   :  { %v628_v10 = vmul.f32 %v541_v6, %v472_v0  ;;  %v629_v54 = vmul.f32 %v545_v7, %v471_v3  ;;  %103 = vrot.lane.b32.xlu1 %v5574_v18, %s4759_s0  ;;  %101 = vrot.lane.b32.xlu0 %v5343_v35, %s4759_s0  ;;  %v2705_v6 = vrot.slane %v5499_v53, %v5257_v37 }
 0x15c   :  { %3808 = vmatprep.subr.bf16.mxu0 %v4555_v5 }
 0x15d   :  { %v4556_v46 = vpack.c.bf16 %v628_v10, %v288_v60  ;;  %3809 = vmatpush1.bf16.msra.mxu0 %v4554_v50  ;;  %v2587_v9 = vpop.permute.xlu1 %2586  ;;  %v2585_v40 = vpop.permute.xlu0 %2584  ;;  %v4557_v42 = vpack.c.bf16 %v629_v54, %v289_v27  ;;  %v5826_v54 = vld [vmem:[#allocation3 + $0xb0] sm:$0xff] }
 0x15e   :  { %v2616_v8 = vsel %vm2606_vm0, %v2585_v40, %v2587_v9  ;;  %v2617_v36 = vsel %vm2606_vm0, %v5545_v32, %v2585_v40  ;;  %v2017_v40 = vrot.slane %v5562_v24, %v5232_v59 }
 0x15f   :  { %v2778_v7 = vmul.f32 %v2697_v15, %v2617_v36  ;;  %v2779_v44 = vmul.f32 %v2701_v16, %v2616_v8  ;;  %107 = vrot.lane.b32.xlu1 %v5599_v30, %s4759_s0  ;;  %105 = vrot.lane.b32.xlu0 %v5572_v55, %s4759_s0  ;;  %v2357_v8 = vrot.slane %v5564_v28, %v5232_v59 }
 0x160   :  { %3849 = vmatprep.subr.bf16.mxu1 %v4557_v42  ;;  %4423 = vmatmul.mubr.msk.bf16.vlgmr.msra.gmra.mxu0 %vm3553_vm9, %v5293_v14  ;;  %v2021_v42 = vrot.slane %v5562_v24, %v5246_v11 }
 0x161   :  { %v4654_v12 = vpack.c.bf16 %v2778_v7, %v2778_v7  ;;  %v4655_v32 = vpack.c.bf16 %v2779_v44, %v2779_v44  ;;  %3850 = vmatpush1.bf16.msra.mxu1 %v4556_v46  ;;  %v5803_v50 = vpop.permute.xlu1 %2590  ;;  %v2589_v49 = vpop.permute.xlu0 %2588  ;;  %3908 = vmatprep.mubr.bf16.mxu0 %v6440_v63  ;;  %v2361_v7 = vrot.slane %v5564_v28, %v5246_v11 }
 0x162   :  { %v2614_v5 = vsel %vm2606_vm0, %v2589_v49, %v5803_v50  ;;  %v2615_v15 = vsel %vm2606_vm0, %v2587_v9, %v2589_v49  ;;  %v2025_v44 = vrot.slane %v5562_v24, %v5257_v37  ;;  %v2369_v49 = vrot.slane %v5564_v28, %v5269_v43 }
 0x163   :  { %v2780_v53 = vmul.f32 %v2705_v6, %v2615_v15  ;;  %v2781_v60 = vmul.f32 %v2709_v51, %v2614_v5  ;;  %444 = vrot.lane.b32.xlu1 %v5574_v18, %s4766_s6  ;;  %442 = vrot.lane.b32.xlu0 %v5343_v35, %s4766_s6  ;;  %v3595_v3 = vsel %vm3557_vm1, %v4654_v12, 0  ;;  %v2029_v51 = vrot.slane %v5562_v24, %v5269_v43 }
 0x164   :  { %4426 = vmatprep.subr.msk.bf16.mxu0 %vm3557_vm1, %v4655_v32  ;;  %4425 = vmatmul.mubr.msk.bf16.vlgmr.msra.gmra.mxu1 %vm3553_vm9, %v5293_v14  ;;  %v5828_v14 = vld [vmem:[#allocation3 + $0xa8] sm:$0xff] }
 0x165   :  { %v4656_v0 = vpack.c.bf16 %v2780_v53, %v2780_v53  ;;  %v4657_v16 = vpack.c.bf16 %v2781_v60, %v2781_v60  ;;  %3883 = vmatpush1.bf16.msra.mxu0 %v3595_v3  ;;  %v1907_v27 = vpop.permute.xlu1 %1906  ;;  %v1905_v10 = vpop.permute.xlu0 %1904  ;;  %3949 = vmatprep.mubr.bf16.mxu1 %v6440_v63 }
 0x166   :  { %v1936_v36 = vsel %vm1926_vm2, %v1905_v10, %v1907_v27  ;;  %v1937_v6 = vsel %vm1926_vm2, %v5576_v57, %v1905_v10  ;;  %v2365_v57 = vrot.slane %v5564_v28, %v5257_v37 }
 0x167   :  { %448 = vrot.lane.b32.xlu1 %v5599_v30, %s4766_s6  ;;  %446 = vrot.lane.b32.xlu0 %v5572_v55, %s4766_s6  ;;  %v3601_v35 = vsel %vm3557_vm1, %v4656_v0, 0  ;;  %v2098_v5 = vmul.f32 %v2017_v40, %v1937_v6  ;;  %v2099_v15 = vmul.f32 %v2021_v42, %v1936_v36  ;;  %v1681_v6 = vrot.slane %v5607_v58, %v5246_v11 }
 0x168   :  { %4428 = vmatprep.subr.msk.bf16.mxu1 %vm3557_vm1, %v4657_v16  ;;  %v5866_v16 = vld [vmem:[#allocation3 + $0xb8] sm:$0xff] }
 0x169   :  { %3924 = vmatpush1.bf16.msra.mxu1 %v3601_v35  ;;  %v5830_v46 = vpop.permute.xlu1 %1910  ;;  %v1909_v9 = vpop.permute.xlu0 %1908 }
 0x16a   :  { %v1935_v24 = vsel %vm1926_vm2, %v1907_v27, %v1909_v9  ;;  %v1934_v28 = vsel %vm1926_vm2, %v1909_v9, %v5830_v46  ;;  %v1677_v27 = vrot.slane %v5607_v58, %v5232_v59 }
 0x16b   :  { %2602 = vrot.lane.b32.xlu1 %v5826_v54, %s4760_s27  ;;  %2600 = vrot.lane.b32.xlu0 %v5828_v14, %s4760_s27  ;;  %v2100_v42 = vmul.f32 %v2025_v44, %v1935_v24  ;;  %v2101_v9 = vmul.f32 %v2029_v51, %v1934_v28  ;;  %v1689_v24 = vrot.slane %v5607_v58, %v5269_v43 }
 0x16d   :  { %v2247_v12 = vpop.permute.xlu1 %2246  ;;  %v2245_v32 = vpop.permute.xlu0 %2244 }
 0x16e   :  { %v2276_v53 = vsel %vm2266_vm3, %v2245_v32, %v2247_v12  ;;  %v2277_v60 = vsel %vm2266_vm3, %v5623_v52, %v2245_v32 }
 0x16f   :  { %v2438_v3 = vmul.f32 %v2357_v8, %v2277_v60  ;;  %v2439_v0 = vmul.f32 %v2361_v7, %v2276_v53  ;;  %1920 = vrot.lane.b32.xlu1 %v5828_v14, %s4761_s3  ;;  %2604 = vrot.lane.b32.xlu0 %v5866_v16, %s4760_s27 }
 0x171   :  { %v4630_v10 = vpack.c.bf16 %v2438_v3, %v2098_v5  ;;  %v5873_v35 = vpop.permute.xlu1 %2250  ;;  %v2249_v52 = vpop.permute.xlu0 %2248  ;;  %v4631_v40 = vpack.c.bf16 %v2439_v0, %v2099_v15  ;;  %v4684_v3 = vld [vmem:[#allocation3 + $0x60] sm:$0xff] }
 0x172   :  { %v2274_v8 = vsel %vm2266_vm3, %v2249_v52, %v5873_v35  ;;  %v2275_v36 = vsel %vm2266_vm3, %v2247_v12, %v2249_v52 }
 0x173   :  { %v2440_v7 = vmul.f32 %v2365_v57, %v2275_v36  ;;  %v2441_v32 = vmul.f32 %v2369_v49, %v2274_v8  ;;  %1924 = vrot.lane.b32.xlu1 %v5866_v16, %s4761_s3  ;;  %1922 = vrot.lane.b32.xlu0 %v5826_v54, %s4761_s3  ;;  %v1685_v57 = vrot.slane %v5607_v58, %v5257_v37  ;;  %v4685_v58 = vld [vmem:[#allocation3 + $0x70] sm:$0xff] }
 0x174   :  { %3884 = vmatprep.subr.bf16.mxu0 %v4631_v40 }
 0x175   :  { %v4632_v44 = vpack.c.bf16 %v2440_v7, %v2100_v42  ;;  %3885 = vmatpush1.bf16.msra.mxu0 %v4630_v10  ;;  %v1567_v5 = vpop.permute.xlu1 %1566  ;;  %v1565_v15 = vpop.permute.xlu0 %1564  ;;  %v4633_v53 = vpack.c.bf16 %v2441_v32, %v2101_v9  ;;  %v889_v32 = vrot.slane %v5664_v38, %v5232_v59 }
 0x176   :  { %v1596_v12 = vsel %vm1586_vm4, %v1565_v15, %v1567_v5  ;;  %v1597_v51 = vsel %vm1586_vm4, %v5651_v45, %v1565_v15 }
 0x177   :  { %v1758_v49 = vmul.f32 %v1677_v27, %v1597_v51  ;;  %v1759_v60 = vmul.f32 %v1681_v6, %v1596_v12  ;;  %2262 = vrot.lane.b32.xlu1 %v5826_v54, %s4762_s28  ;;  %2260 = vrot.lane.b32.xlu0 %v5828_v14, %s4762_s28  ;;  %v897_v12 = vrot.slane %v5664_v38, %v5257_v37 }
 0x178   :  { %3925 = vmatprep.subr.bf16.mxu1 %v4633_v53  ;;  %v1233_v53 = vrot.slane %v5666_v61, %v5246_v11  ;;  %v901_v51 = vrot.slane %v5664_v38, %v5269_v43 }
 0x179   :  { %v4606_v0 = vpack.c.bf16 %v1758_v49, %v4684_v3  ;;  %3926 = vmatpush1.bf16.msra.mxu1 %v4632_v44  ;;  %v5901_v28 = vpop.permute.xlu1 %1570  ;;  %v1569_v45 = vpop.permute.xlu0 %1568  ;;  %v4607_v10 = vpack.c.bf16 %v1759_v60, %v5322_v1  ;;  %v893_v44 = vrot.slane %v5664_v38, %v5246_v11  ;;  %v1241_v60 = vrot.slane %v5666_v61, %v5269_v43 }
 0x17a   :  { %v1594_v52 = vsel %vm1586_vm4, %v1569_v45, %v5901_v28  ;;  %v1595_v40 = vsel %vm1586_vm4, %v1567_v5, %v1569_v45 }
 0x17b   :  { %v1760_v27 = vmul.f32 %v1685_v57, %v1595_v40  ;;  %v1761_v42 = vmul.f32 %v1689_v24, %v1594_v52  ;;  %1580 = vrot.lane.b32.xlu1 %v5828_v14, %s4763_s29  ;;  %2264 = vrot.lane.b32.xlu0 %v5866_v16, %s4762_s28 }
 0x17c   :  { %3886 = vmatprep.subr.bf16.mxu0 %v4607_v10 }
 0x17d   :  { %v4608_v8 = vpack.c.bf16 %v1760_v27, %v4685_v58  ;;  %3887 = vmatpush1.bf16.msra.mxu0 %v4606_v0  ;;  %v777_v1 = vpop.permute.xlu1 %776  ;;  %v775_v36 = vpop.permute.xlu0 %774  ;;  %v4609_v6 = vpack.c.bf16 %v1761_v42, %v5345_v2  ;;  %v1229_v2 = vrot.slane %v5666_v61, %v5232_v59 }
 0x17e   :  { %v809_v5 = vsel %vm798_vm5, %v775_v36, %v777_v1  ;;  %v810_v15 = vsel %vm798_vm5, %v5672_v22, %v775_v36  ;;  %v1237_v22 = vrot.slane %v5666_v61, %v5257_v37 }
 0x17f   :  { %1584 = vrot.lane.b32.xlu1 %v5866_v16, %s4763_s29  ;;  %1582 = vrot.lane.b32.xlu0 %v5826_v54, %s4763_s29  ;;  %v970_v24 = vmul.f32 %v889_v32, %v810_v15  ;;  %v971_v3 = vmul.f32 %v893_v44, %v809_v5 }
 0x180   :  { %3927 = vmatprep.subr.bf16.mxu1 %v4609_v6 }
 0x181   :  { %3928 = vmatpush1.bf16.msra.mxu1 %v4608_v8  ;;  %v5918_v9 = vpop.permute.xlu1 %780  ;;  %v779_v7 = vpop.permute.xlu0 %778 }
 0x182   :  { %v808_v38 = vsel %vm798_vm5, %v777_v1, %v779_v7  ;;  %v807_v61 = vsel %vm798_vm5, %v779_v7, %v5918_v9 }
 0x183   :  { %792 = vrot.lane.b32.xlu1 %v5828_v14, %s4764_s30  ;;  %790 = vrot.lane.b32.xlu0 %v5597_v13, %s4764_s30  ;;  %v972_v58 = vmul.f32 %v897_v12, %v808_v38  ;;  %v973_v36 = vmul.f32 %v901_v51, %v807_v61  ;;  %v209_v12 = vrot.slane %v5724_v33, %v5232_v59 }
 0x184   :  { %v213_v51 = vrot.slane %v5724_v33, %v5246_v11 }
 0x185   :  { %v1117_v57 = vpop.permute.xlu1 %1116  ;;  %v1115_v49 = vpop.permute.xlu0 %1114 }
 0x186   :  { %v1149_v0 = vsel %vm1138_vm6, %v1115_v49, %v1117_v57  ;;  %v1150_v45 = vsel %vm1138_vm6, %v5713_v41, %v1115_v49  ;;  %v2640_v49 = vld [vmem:[#allocation6 + $0x140] ss:$8 sm:$0xf] }
 0x187   :  { %v1310_v10 = vmul.f32 %v1229_v2, %v1150_v45  ;;  %v1311_v52 = vmul.f32 %v1233_v53, %v1149_v0  ;;  %1130 = vrot.lane.b32.xlu1 %v5597_v13, %s4765_s5  ;;  %794 = vrot.lane.b32.xlu0 %v5826_v54, %s4764_s30  ;;  %v217_v0 = vrot.slane %v5724_v33, %v5257_v37 }
 0x188   :  { %v221_v45 = vrot.slane %v5724_v33, %v5269_v43 }
 0x189   :  { %v4582_v40 = vpack.c.bf16 %v1310_v10, %v970_v24  ;;  %v5959_v27 = vpop.permute.xlu1 %1120  ;;  %v1119_v42 = vpop.permute.xlu0 %1118  ;;  %v4583_v41 = vpack.c.bf16 %v1311_v52, %v971_v3  ;;  %v553_v3 = vrot.slane %v5726_v29, %v5246_v11 }
 0x18a   :  { %v1147_v8 = vsel %vm1138_vm6, %v1119_v42, %v5959_v27  ;;  %v1148_v1 = vsel %vm1138_vm6, %v1117_v57, %v1119_v42  ;;  %v549_v57 = vrot.slane %v5726_v29, %v5232_v59 }
 0x18b   :  { %v1312_v6 = vmul.f32 %v1237_v22, %v1148_v1  ;;  %v1313_v32 = vmul.f32 %v1241_v60, %v1147_v8  ;;  %1134 = vrot.lane.b32.xlu1 %v5826_v54, %s4765_s5  ;;  %1132 = vrot.lane.b32.xlu0 %v5828_v14, %s4765_s5  ;;  %v2641_v22 = vld [vmem:[#allocation6 + $0x140] ss:$8 sm:$0xf0] }
 0x18c   :  { %3888 = vmatprep.subr.bf16.mxu0 %v4583_v41  ;;  %v6001_v52 = vor.u32 %v2641_v22, %v2640_v49  ;;  %v3007_v1 = vld [vmem:[%s6435_s2] sm:$0xff] }
 0x18d   :  { %v4584_v7 = vpack.c.bf16 %v1312_v6, %v972_v58  ;;  %3889 = vmatpush1.bf16.msra.mxu0 %v4582_v40  ;;  %v96_v44 = vpop.permute.xlu1 %95  ;;  %v94_v2 = vpop.permute.xlu0 %93  ;;  %v4585_v5 = vpack.c.bf16 %v1313_v32, %v973_v36 }
 0x18e   :  { %v130_v60 = vsel %vm119_vm7, %v94_v2, %v96_v44  ;;  %v131_v24 = vsel %vm119_vm7, %v5732_v4, %v94_v2  ;;  %v557_v4 = vrot.slane %v5726_v29, %v5257_v37 }
 0x18f   :  { %111 = vrot.lane.b32.xlu1 %v5828_v14, %s4759_s0  ;;  %109 = vrot.lane.b32.xlu0 %v5597_v13, %s4759_s0  ;;  %v290_v61 = vmul.f32 %v209_v12, %v131_v24  ;;  %v291_v40 = vmul.f32 %v213_v51, %v130_v60 }
 0x190   :  { %3929 = vmatprep.subr.bf16.mxu1 %v4585_v5 }
 0x191   :  { %3930 = vmatpush1.bf16.msra.mxu1 %v4584_v7  ;;  %v5974_v15 = vpop.permute.xlu1 %99  ;;  %v98_v53 = vpop.permute.xlu0 %97  ;;  %v2713_v7 = vrot.slane %v6001_v52, %v4944_v17 }
 0x192   :  { %v129_v33 = vsel %vm119_vm7, %v96_v44, %v98_v53 }
 0x193   :  { %450 = vrot.lane.b32.xlu1 %v5597_v13, %s4766_s6  ;;  %113 = vrot.lane.b32.xlu0 %v5826_v54, %s4759_s0  ;;  %v561_v13 = vrot.slane %v5726_v29, %v5269_v43  ;;  %v128_v29 = vsel %vm119_vm7, %v98_v53, %v5974_v15  ;;  %v292_v44 = vmul.f32 %v217_v0, %v129_v33 }
 0x194   :  { %v2717_v53 = vrot.slane %v6001_v52, %v4953_v21  ;;  %v293_v12 = vmul.f32 %v221_v45, %v128_v29 }
 0x195   :  { %v437_v38 = vpop.permute.xlu1 %436  ;;  %v435_v10 = vpop.permute.xlu0 %434 }
 0x196   :  { %v469_v42 = vsel %vm458_vm8, %v435_v10, %v437_v38  ;;  %v470_v41 = vsel %vm458_vm8, %v5773_v31, %v435_v10 }
 0x197   :  { %v630_v58 = vmul.f32 %v549_v57, %v470_v41  ;;  %v631_v8 = vmul.f32 %v553_v3, %v469_v42  ;;  %454 = vrot.lane.b32.xlu1 %v5826_v54, %s4766_s6  ;;  %452 = vrot.lane.b32.xlu0 %v5828_v14, %s4766_s6 }
 0x199   :  { %v4558_v31 = vpack.c.bf16 %v630_v58, %v290_v61  ;;  %v6020_v36 = vpop.permute.xlu1 %440  ;;  %v439_v6 = vpop.permute.xlu0 %438  ;;  %v4559_v32 = vpack.c.bf16 %v631_v8, %v291_v40  ;;  %v1960_v8 = vld [vmem:[#allocation6 + $0x86] ss:$8 sm:$0xf] }
 0x19a   :  { %v467_v2 = vsel %vm458_vm8, %v439_v6, %v6020_v36  ;;  %v468_v5 = vsel %vm458_vm8, %v437_v38, %v439_v6  ;;  %v2721_v38 = vrot.slane %v6001_v52, %v4970_v26 }
 0x19b   :  { %v632_v51 = vmul.f32 %v557_v4, %v468_v5  ;;  %v633_v57 = vmul.f32 %v561_v13, %v467_v2  ;;  %3890 = vmatprep.subr.bf16.mxu0 %v4559_v32  ;;  %3010 = vperm.xlu0 %4680, %v3007_v1   ;;  %v2725_v4 = vrot.slane %v6001_v52, %v4958_v23  ;;  %v6043_v13 = vld [vmem:[%s6434_s1] sm:$0xf]  ;;  %v1961_v32 = vld [vmem:[#allocation6 + $0x86] ss:$8 sm:$0xf0]  ;;  %s4768_s1 = smov [#allocation8]  }
 0x19c   :  { %3891 = vmatpush1.bf16.msra.mxu0 %v4558_v31  ;;  %s4176_s12 = sshll.u32 %s4768_s1, 4  ;;  %s4177_s12 = int_to_ptr.vmem [resolvable:$true] %s4176_s12 }
 0x19d   :  { %v4560_v49 = vpack.c.bf16 %v632_v51, %v292_v44  ;;  %v2595_v22 = vpop.permute.xlu1 %2594  ;;  %v2593_v60 = vpop.permute.xlu0 %2592  ;;  %v4561_v24 = vpack.c.bf16 %v633_v57, %v293_v12  ;;  %v2301_v44 = vld [vmem:[#allocation6 + $0x87] ss:$8 sm:$0xf0]  ;;  %s4729_s13 = scalar_lea.vmem %s4177_s12, 3072  ;;  %p4734_p11 = scmp.lt.s32.totalorder %s4177_s12, %s4177_s12 }
 0x19e   :  { %v2612_v3 = vsel %vm2606_vm0, %v2593_v60, %v2595_v22  ;;  %v2613_v0 = vsel %vm2606_vm0, %v5803_v50, %v2593_v60  ;;  %v6068_v60 = vor.u32 %v1961_v32, %v1960_v8  ;;  %p4730_p10 = scmp.ne.s32.totalorder %s4177_s12, %s4729_s13  ;;  %p4735_p12 = scmp.lt.s32.totalorder %s4729_s13, %s4729_s13 }
 0x19f   :  { %v2782_v45 = vmul.f32 %v2713_v7, %v2613_v0  ;;  %v2783_v10 = vmul.f32 %v2717_v53, %v2612_v3  ;;  %3931 = vmatprep.subr.bf16.mxu1 %v4561_v24  ;;  %4427 = vmatmul.mubr.msk.bf16.vlgmr.msra.gmra.mxu0 %vm3553_vm9, %v6043_v13  ;;  %v2300_v7 = vld [vmem:[#allocation6 + $0x87] ss:$8 sm:$0xf] }
 0x1a0   :  { %3932 = vmatpush1.bf16.msra.mxu1 %v4560_v49  ;;  %3990 = vmatprep.mubr.bf16.mxu0 %v6440_v63  ;;  %v6048_v50 = vpop.f32.mrf.mxu1  ;;  %v6072_v3 = vor.u32 %v2301_v44, %v2300_v7  ;;  %p4736_p13 = por %p4735_p12, %p4734_p11 }
 0x1a1   :  { %6441 = vst [vmem:[#allocation12_spill] sm:$0xff] %v6048_v50  ;;  %v4658_v61 = vpack.c.bf16 %v2782_v45, %v2782_v45  ;;  %v4659_v40 = vpack.c.bf16 %v2783_v10, %v2783_v10  ;;  %v6050_v42 = vpop.permute.xlu1 %2598  ;;  %v2597_v41 = vpop.permute.xlu0 %2596 }
 0x1a2   :  { %v2610_v33 = vsel %vm2606_vm0, %v2597_v41, %v6050_v42  ;;  %v2611_v58 = vsel %vm2606_vm0, %v2595_v22, %v2597_v41  ;;  %v6057_v29 = vpop.f32.mrf.mxu1  ;;  %v2377_v41 = vrot.slane %v6072_v3, %v4953_v21  ;;  %v2381_v44 = vrot.slane %v6072_v3, %v4970_v26  ;;  %p4737_p0 = pnand %p4736_p13, %p4730_p10 }
 0x1a3   :  { %6442 = vst [vmem:[#allocation13_spill] sm:$0xff] %v6057_v29  ;;  %v2784_v1 = vmul.f32 %v2721_v38, %v2611_v58  ;;  %v2785_v31 = vmul.f32 %v2725_v4, %v2610_v33  ;;  %4430 = vmatprep.subr.msk.bf16.mxu0 %vm3557_vm1, %v4659_v40  ;;  %v3607_v6 = vsel %vm3557_vm1, %v4658_v61, 0  ;;  %4429 = vmatmul.mubr.msk.bf16.vlgmr.msra.gmra.mxu1 %vm3553_vm9, %v6043_v13  ;;  %v1620_v33 = vld [vmem:[#allocation6 + $0x85] ss:$8 sm:$0xf] }
 0x1a4   :  { %3965 = vmatpush1.bf16.msra.mxu0 %v3607_v6  ;;  %4031 = vmatprep.mubr.bf16.mxu1 %v6440_v63  ;;  %v6064_v2 = vpop.f32.mrf.mxu0  ;;  %v3709_v5 = vpop.f32.mrf.mxu1  ;;  %v2033_v4 = vrot.slane %v6068_v60, %v4944_v17  ;;  %v2037_v61 = vrot.slane %v6068_v60, %v4953_v21  ;;  %v2373_v40 = vrot.slane %v6072_v3, %v4944_v17  ;;  %v1621_v58 = vld [vmem:[#allocation6 + $0x85] ss:$8 sm:$0xf0] }
 0x1a5   :  { %v4660_v53 = vpack.c.bf16 %v2784_v1, %v2784_v1  ;;  %v4661_v12 = vpack.c.bf16 %v2785_v31, %v2785_v31  ;;  %v1915_v51 = vpop.permute.xlu1 %1914  ;;  %v1913_v57 = vpop.permute.xlu0 %1912  ;;  %v2041_v31 = vrot.slane %v6068_v60, %v4970_v26  ;;  %v2045_v6 = vrot.slane %v6068_v60, %v4958_v23 }
 0x1a6   :  { %v6066_v49 = vpop.f32.mrf.mxu0  ;;  %v3710_v22 = vpop.f32.mrf.mxu1  ;;  %v1932_v8 = vsel %vm1926_vm2, %v1913_v57, %v1915_v51  ;;  %v1933_v1 = vsel %vm1926_vm2, %v5830_v46, %v1913_v57  ;;  %v2385_v46 = vrot.slane %v6072_v3, %v4958_v23 }
 0x1a7   :  { %6443 = vst [vmem:[#allocation14_spill] sm:$0xff] %v6066_v49  ;;  %4432 = vmatprep.subr.msk.bf16.mxu1 %vm3557_vm1, %v4661_v12  ;;  %v3613_v24 = vsel %vm3557_vm1, %v4660_v53, 0  ;;  %v6102_v12 = vor.u32 %v1621_v58, %v1620_v33  ;;  %v2102_v57 = vmul.f32 %v2033_v4, %v1933_v1  ;;  %v2103_v22 = vmul.f32 %v2037_v61, %v1932_v8 }
 0x1a8   :  { %4006 = vmatpush1.bf16.msra.mxu1 %v3613_v24  ;;  %v3668_v0 = vpop.f32.mrf.mxu0 }
 0x1a9   :  { %v6074_v38 = vpop.permute.xlu1 %1918  ;;  %v1917_v45 = vpop.permute.xlu0 %1916  ;;  %v1693_v61 = vrot.slane %v6102_v12, %v4944_v17 }
 0x1aa   :  { %v3669_v10 = vpop.f32.mrf.mxu0  ;;  %v1931_v29 = vsel %vm1926_vm2, %v1915_v51, %v1917_v45 }
 0x1ab   :  { %v1930_v10 = vsel %vm1926_vm2, %v1917_v45, %v6074_v38 }
 0x1ac   :  { %v2105_v51 = vmul.f32 %v2045_v6, %v1930_v10 }
 0x1ad   :  { %v2255_v32 = vpop.permute.xlu1 %2254  ;;  %v2253_v7 = vpop.permute.xlu0 %2252 }
 0x1ae   :  { %v2272_v5 = vsel %vm2266_vm3, %v2253_v7, %v2255_v32  ;;  %v2273_v53 = vsel %vm2266_vm3, %v5873_v35, %v2253_v7 }
 0x1af   :  { %v2442_v24 = vmul.f32 %v2373_v40, %v2273_v53  ;;  %v2443_v0 = vmul.f32 %v2377_v41, %v2272_v5  ;;  %v1697_v40 = vrot.slane %v6102_v12, %v4953_v21  ;;  %v2104_v41 = vmul.f32 %v2041_v31, %v1931_v29  ;;  %v4687_v31 = vld [vmem:[#allocation3 + $0x80] sm:$0xff] }
 0x1b0   :  { %v1701_v29 = vrot.slane %v6102_v12, %v4970_v26 }
 0x1b1   :  { %v4634_v50 = vpack.c.bf16 %v2442_v24, %v2102_v57  ;;  %v6109_v49 = vpop.permute.xlu1 %2258  ;;  %v2257_v35 = vpop.permute.xlu0 %2256  ;;  %v4635_v7 = vpack.c.bf16 %v2443_v0, %v2103_v22 }
 0x1b2   :  { %v2270_v33 = vsel %vm2266_vm3, %v2257_v35, %v6109_v49  ;;  %v2271_v4 = vsel %vm2266_vm3, %v2255_v32, %v2257_v35 }
 0x1b3   :  { %v2444_v45 = vmul.f32 %v2381_v44, %v2271_v4  ;;  %v2445_v58 = vmul.f32 %v2385_v46, %v2270_v33  ;;  %3966 = vmatprep.subr.bf16.mxu0 %v4635_v7  ;;  %v832_v33 = vld [vmem:[#allocation6 + $0x82] ss:$8 sm:$0xf] }
 0x1b4   :  { %3967 = vmatpush1.bf16.msra.mxu0 %v4634_v50  ;;  %v1705_v50 = vrot.slane %v6102_v12, %v4958_v23  ;;  %v833_v4 = vld [vmem:[#allocation6 + $0x82] ss:$8 sm:$0xf0] }
 0x1b5   :  { %v4636_v8 = vpack.c.bf16 %v2444_v45, %v2104_v41  ;;  %v1575_v1 = vpop.permute.xlu1 %1574  ;;  %v1573_v5 = vpop.permute.xlu0 %1572  ;;  %v4637_v53 = vpack.c.bf16 %v2445_v58, %v2105_v51  ;;  %v6139_v58 = vor.u32 %v833_v4, %v832_v33 }
 0x1b6   :  { %v1592_v57 = vsel %vm1586_vm4, %v1573_v5, %v1575_v1  ;;  %v1593_v32 = vsel %vm1586_vm4, %v5901_v28, %v1573_v5 }
 0x1b7   :  { %v1762_v22 = vmul.f32 %v1693_v61, %v1593_v32  ;;  %v1763_v24 = vmul.f32 %v1697_v40, %v1592_v57  ;;  %4007 = vmatprep.subr.bf16.mxu1 %v4637_v53  ;;  %v1172_v61 = vld [vmem:[#allocation6 + $0x83] ss:$8 sm:$0xf]  ;;  %v905_v53 = vrot.slane %v6139_v58, %v4944_v17  ;;  %v909_v57 = vrot.slane %v6139_v58, %v4953_v21 }
 0x1b8   :  { %4008 = vmatpush1.bf16.msra.mxu1 %v4636_v8  ;;  %v1173_v40 = vld [vmem:[#allocation6 + $0x83] ss:$8 sm:$0xf0] }
 0x1b9   :  { %v4610_v6 = vpack.c.bf16 %v1762_v22, %v4687_v31  ;;  %v6129_v44 = vpop.permute.xlu1 %1578  ;;  %v1577_v46 = vpop.permute.xlu0 %1576  ;;  %v4611_v0 = vpack.c.bf16 %v1763_v24, %v5574_v18  ;;  %v6141_v8 = vor.u32 %v1173_v40, %v1172_v61  ;;  %v913_v24 = vrot.slane %v6139_v58, %v4970_v26 }
 0x1ba   :  { %v1590_v28 = vsel %vm1586_vm4, %v1577_v46, %v6129_v44  ;;  %v1591_v10 = vsel %vm1586_vm4, %v1575_v1, %v1577_v46 }
 0x1bb   :  { %v1764_v35 = vmul.f32 %v1701_v29, %v1591_v10  ;;  %v1765_v7 = vmul.f32 %v1705_v50, %v1590_v28  ;;  %3968 = vmatprep.subr.bf16.mxu0 %v4611_v0  ;;  %v917_v29 = vrot.slane %v6139_v58, %v4958_v23  ;;  %v1253_v0 = vrot.slane %v6141_v8, %v4970_v26 }
 0x1bc   :  { %3969 = vmatpush1.bf16.msra.mxu0 %v4610_v6 }
 0x1bd   :  { %v4612_v41 = vpack.c.bf16 %v1764_v35, %v5572_v55  ;;  %v785_v51 = vpop.permute.xlu1 %784  ;;  %v783_v45 = vpop.permute.xlu0 %782  ;;  %v4613_v18 = vpack.c.bf16 %v1765_v7, %v5599_v30  ;;  %v1245_v55 = vrot.slane %v6141_v8, %v4944_v17  ;;  %v1249_v30 = vrot.slane %v6141_v8, %v4953_v21 }
 0x1be   :  { %v805_v32 = vsel %vm798_vm5, %v783_v45, %v785_v51  ;;  %v806_v22 = vsel %vm798_vm5, %v5918_v9, %v783_v45  ;;  %v1257_v9 = vrot.slane %v6141_v8, %v4958_v23 }
 0x1bf   :  { %4009 = vmatprep.subr.bf16.mxu1 %v4613_v18  ;;  %v974_v28 = vmul.f32 %v905_v53, %v806_v22  ;;  %v975_v10 = vmul.f32 %v909_v57, %v805_v32  ;;  %v152_v32 = vld [vmem:[#allocation6 + $0x80] ss:$8 sm:$0xf] }
 0x1c0   :  { %4010 = vmatpush1.bf16.msra.mxu1 %v4612_v41  ;;  %v153_v22 = vld [vmem:[#allocation6 + $0x80] ss:$8 sm:$0xf0] }
 0x1c1   :  { %v6143_v1 = vpop.permute.xlu1 %788  ;;  %v787_v5 = vpop.permute.xlu0 %786 }
 0x1c2   :  { %v803_v33 = vsel %vm798_vm5, %v787_v5, %v6143_v1  ;;  %v804_v4 = vsel %vm798_vm5, %v785_v51, %v787_v5  ;;  %v492_v51 = vld [vmem:[#allocation6 + $0x81] ss:$8 sm:$0xf] }
 0x1c3   :  { %v976_v53 = vmul.f32 %v913_v24, %v804_v4  ;;  %v977_v57 = vmul.f32 %v917_v29, %v803_v33  ;;  %v493_v5 = vld [vmem:[#allocation6 + $0x81] ss:$8 sm:$0xf0] }
 0x1c5   :  { %v1125_v50 = vpop.permute.xlu1 %1124  ;;  %v1123_v31 = vpop.permute.xlu0 %1122 }
 0x1c6   :  { %v1145_v6 = vsel %vm1138_vm6, %v1123_v31, %v1125_v50  ;;  %v1146_v46 = vsel %vm1138_vm6, %v5959_v27, %v1123_v31 }
 0x1c7   :  { %v1314_v35 = vmul.f32 %v1245_v55, %v1146_v46  ;;  %v1315_v7 = vmul.f32 %v1249_v30, %v1145_v6 }
 0x1c9   :  { %v4586_v61 = vpack.c.bf16 %v1314_v35, %v974_v28  ;;  %v6176_v40 = vpop.permute.xlu1 %1128  ;;  %v1127_v27 = vpop.permute.xlu0 %1126  ;;  %v4587_v41 = vpack.c.bf16 %v1315_v7, %v975_v10  ;;  %v6183_v10 = vor.u32 %v153_v22, %v152_v32  ;;  %v6185_v35 = vor.u32 %v493_v5, %v492_v51 }
 0x1ca   :  { %v1143_v45 = vsel %vm1138_vm6, %v1127_v27, %v6176_v40  ;;  %v1144_v18 = vsel %vm1138_vm6, %v1125_v50, %v1127_v27 }
 0x1cb   :  { %v1316_v55 = vmul.f32 %v1253_v0, %v1144_v18  ;;  %v1317_v30 = vmul.f32 %v1257_v9, %v1143_v45  ;;  %3970 = vmatprep.subr.bf16.mxu0 %v4587_v41  ;;  %v225_v50 = vrot.slane %v6183_v10, %v4944_v17  ;;  %v229_v0 = vrot.slane %v6183_v10, %v4953_v21 }
 0x1cc   :  { %3971 = vmatpush1.bf16.msra.mxu0 %v4586_v61  ;;  %v565_v9 = vrot.slane %v6185_v35, %v4944_v17  ;;  %v569_v7 = vrot.slane %v6185_v35, %v4953_v21  ;;  %v233_v61 = vrot.slane %v6183_v10, %v4970_v26  ;;  %v237_v27 = vrot.slane %v6183_v10, %v4958_v23 }
 0x1cd   :  { %v4588_v31 = vpack.c.bf16 %v1316_v55, %v976_v53  ;;  %v104_v6 = vpop.permute.xlu1 %103  ;;  %v102_v46 = vpop.permute.xlu0 %101  ;;  %v4589_v28 = vpack.c.bf16 %v1317_v30, %v977_v57  ;;  %v573_v18 = vrot.slane %v6185_v35, %v4970_v26 }
 0x1ce   :  { %v126_v33 = vsel %vm119_vm7, %v102_v46, %v104_v6  ;;  %v127_v4 = vsel %vm119_vm7, %v5974_v15, %v102_v46  ;;  %v577_v15 = vrot.slane %v6185_v35, %v4958_v23  ;;  %v2729_v46 = vrot.slane %v6001_v52, %v5232_v59 }
 0x1cf   :  { %4011 = vmatprep.subr.bf16.mxu1 %v4589_v28  ;;  %v294_v53 = vmul.f32 %v225_v50, %v127_v4  ;;  %v295_v57 = vmul.f32 %v229_v0, %v126_v33  ;;  %v2733_v28 = vrot.slane %v6001_v52, %v5246_v11 }
 0x1d0   :  { %4012 = vmatpush1.bf16.msra.mxu1 %v4588_v31 }
 0x1d1   :  { %v6187_v24 = vpop.permute.xlu1 %107  ;;  %v106_v29 = vpop.permute.xlu0 %105 }
 0x1d2   :  { %v124_v32 = vsel %vm119_vm7, %v106_v29, %v6187_v24  ;;  %v125_v22 = vsel %vm119_vm7, %v104_v6, %v106_v29 }
 0x1d3   :  { %v296_v50 = vmul.f32 %v233_v61, %v125_v22  ;;  %v297_v6 = vmul.f32 %v237_v27, %v124_v32 }
 0x1d5   :  { %v445_v41 = vpop.permute.xlu1 %444  ;;  %v443_v45 = vpop.permute.xlu0 %442 }
 0x1d6   :  { %v465_v17 = vsel %vm458_vm8, %v443_v45, %v445_v41  ;;  %v466_v21 = vsel %vm458_vm8, %v6020_v36, %v443_v45 }
 0x1d7   :  { %v634_v55 = vmul.f32 %v565_v9, %v466_v21  ;;  %v635_v30 = vmul.f32 %v569_v7, %v465_v17  ;;  %v2737_v17 = vrot.slane %v6001_v52, %v5257_v37  ;;  %v2741_v21 = vrot.slane %v6001_v52, %v5269_v43 }
 0x1d9   :  { %v4562_v51 = vpack.c.bf16 %v634_v55, %v294_v53  ;;  %v6220_v5 = vpop.permute.xlu1 %448  ;;  %v447_v36 = vpop.permute.xlu0 %446  ;;  %v4563_v31 = vpack.c.bf16 %v635_v30, %v295_v57 }
 0x1da   :  { %v463_v23 = vsel %vm458_vm8, %v447_v36, %v6220_v5  ;;  %v464_v26 = vsel %vm458_vm8, %v445_v41, %v447_v36 }
 0x1db   :  { %v636_v29 = vmul.f32 %v573_v18, %v464_v26  ;;  %v637_v0 = vmul.f32 %v577_v15, %v463_v23  ;;  %3972 = vmatprep.subr.bf16.mxu0 %v4563_v31 }
 0x1dc   :  { %3973 = vmatpush1.bf16.msra.mxu0 %v4562_v51 }
 0x1dd   :  { %v4564_v9 = vpack.c.bf16 %v636_v29, %v296_v50  ;;  %v2603_v7 = vpop.permute.xlu1 %2602  ;;  %v2601_v33 = vpop.permute.xlu0 %2600  ;;  %v4565_v4 = vpack.c.bf16 %v637_v0, %v297_v6  ;;  %v2053_v50 = vrot.slane %v6068_v60, %v5246_v11 }
 0x1de   :  { %v2608_v45 = vsel %vm2606_vm0, %v2601_v33, %v2603_v7  ;;  %v2609_v41 = vsel %vm2606_vm0, %v6050_v42, %v2601_v33 }
 0x1df   :  { %v2786_v61 = vmul.f32 %v2729_v46, %v2609_v41  ;;  %v2787_v27 = vmul.f32 %v2733_v28, %v2608_v45  ;;  %4013 = vmatprep.subr.bf16.mxu1 %v4565_v4  ;;  %4431 = vmatmul.mubr.msk.bf16.vlgmr.msra.gmra.mxu0 %vm3553_vm9, %v6043_v13  ;;  %v2049_v28 = vrot.slane %v6068_v60, %v5232_v59 }
 0x1e0   :  { %4014 = vmatpush1.bf16.msra.mxu1 %v4564_v9  ;;  %4072 = vmatprep.mubr.bf16.mxu0 %v6440_v63  ;;  %v6243_v18 = vpop.f32.mrf.mxu0  ;;  %v2389_v9 = vrot.slane %v6072_v3, %v5232_v59  ;;  %v2061_v45 = vrot.slane %v6068_v60, %v5269_v43 }
 0x1e1   :  { %v4662_v15 = vpack.c.bf16 %v2786_v61, %v2786_v61  ;;  %v4663_v53 = vpack.c.bf16 %v2787_v27, %v2787_v27  ;;  %v1921_v42 = vpop.permute.xlu1 %1920  ;;  %v2605_v57 = vpop.permute.xlu0 %2604  ;;  %v2397_v61 = vrot.slane %v6072_v3, %v5257_v37 }
 0x1e2   :  { %v2607_v55 = vsel %vm2606_vm0, %v2603_v7, %v2605_v57  ;;  %v2630_v30 = vsel %vm2606_vm0, %v2605_v57, %v4948_v19  ;;  %v6250_v52 = vpop.f32.mrf.mxu0  ;;  %v2393_v7 = vrot.slane %v6072_v3, %v5246_v11 }
 0x1e3   :  { %v2788_v32 = vmul.f32 %v2737_v17, %v2607_v55  ;;  %v2789_v22 = vmul.f32 %v2741_v21, %v2630_v30  ;;  %4434 = vmatprep.subr.msk.bf16.mxu0 %vm3557_vm1, %v4663_v53  ;;  %v3619_v51 = vsel %vm3557_vm1, %v4662_v15, 0  ;;  %4433 = vmatmul.mubr.msk.bf16.vlgmr.msra.gmra.mxu1 %vm3553_vm9, %v6043_v13  ;;  %v2401_v53 = vrot.slane %v6072_v3, %v5269_v43 }
 0x1e4   :  { %4047 = vmatpush1.bf16.msra.mxu0 %v3619_v51  ;;  %4113 = vmatprep.mubr.bf16.mxu1 %v6440_v63  ;;  %v6257_v36 = vpop.f32.mrf.mxu1  ;;  %v3750_v31 = vpop.f32.mrf.mxu0  ;;  %v1929_v63 = vsel %vm1926_vm2, %v6074_v38, %v1921_v42  ;;  %v2057_v38 = vrot.slane %v6068_v60, %v5257_v37  ;;  %v1721_v3 = vrot.slane %v6102_v12, %v5269_v43 }
 0x1e5   :  { %v4664_v23 = vpack.c.bf16 %v2788_v32, %v2788_v32  ;;  %v4665_v26 = vpack.c.bf16 %v2789_v22, %v2789_v22  ;;  %v1925_v19 = vpop.permute.xlu1 %1924  ;;  %v1923_v46 = vpop.permute.xlu0 %1922  ;;  %v2106_v27 = vmul.f32 %v2049_v28, %v1929_v63  ;;  %v1709_v22 = vrot.slane %v6102_v12, %v5232_v59 }
 0x1e6   :  { %v6263_v6 = vpop.f32.mrf.mxu1  ;;  %v3751_v29 = vpop.f32.mrf.mxu0  ;;  %v1928_v33 = vsel %vm1926_vm2, %v1921_v42, %v1923_v46  ;;  %v1950_v60 = vsel %vm1926_vm2, %v1925_v19, %v5068_v48  ;;  %v1927_v32 = vsel %vm1926_vm2, %v1923_v46, %v1925_v19  ;;  %v1717_v46 = vrot.slane %v6102_v12, %v5257_v37 }
 0x1e7   :  { %4436 = vmatprep.subr.msk.bf16.mxu1 %vm3557_vm1, %v4665_v26  ;;  %v3625_v0 = vsel %vm3557_vm1, %v4664_v23, 0  ;;  %v2107_v57 = vmul.f32 %v2053_v50, %v1928_v33  ;;  %v1713_v26 = vrot.slane %v6102_v12, %v5246_v11  ;;  %v2109_v48 = vmul.f32 %v2061_v45, %v1950_v60 }
 0x1e8   :  { %4088 = vmatpush1.bf16.msra.mxu1 %v3625_v0  ;;  %v3791_v4 = vpop.f32.mrf.mxu1  ;;  %v2108_v50 = vmul.f32 %v2057_v38, %v1927_v32  ;;  %v925_v60 = vrot.slane %v6139_v58, %v5246_v11  ;;  %v933_v32 = vrot.slane %v6139_v58, %v5269_v43 }
 0x1e9   :  { %v2263_v41 = vpop.permute.xlu1 %2262  ;;  %v2261_v17 = vpop.permute.xlu0 %2260 }
 0x1ea   :  { %v2268_v21 = vsel %vm2266_vm3, %v2261_v17, %v2263_v41  ;;  %v2269_v15 = vsel %vm2266_vm3, %v6109_v49, %v2261_v17  ;;  %v3792_v42 = vpop.f32.mrf.mxu1 }
 0x1eb   :  { %v2446_v55 = vmul.f32 %v2389_v9, %v2269_v15  ;;  %v2447_v30 = vmul.f32 %v2393_v7, %v2268_v21 }
 0x1ed   :  { %v4638_v51 = vpack.c.bf16 %v2446_v55, %v2106_v27  ;;  %v1581_v31 = vpop.permute.xlu1 %1580  ;;  %v2265_v49 = vpop.permute.xlu0 %2264  ;;  %v4639_v23 = vpack.c.bf16 %v2447_v30, %v2107_v57  ;;  %v1261_v57 = vrot.slane %v6141_v8, %v5232_v59 }
 0x1ee   :  { %v2267_v28 = vsel %vm2266_vm3, %v2263_v41, %v2265_v49  ;;  %v2290_v19 = vsel %vm2266_vm3, %v2265_v49, %v5066_v47  ;;  %v1589_v29 = vsel %vm1586_vm4, %v6129_v44, %v1581_v31  ;;  %v1269_v49 = vrot.slane %v6141_v8, %v5257_v37 }
 0x1ef   :  { %v2448_v63 = vmul.f32 %v2397_v61, %v2267_v28  ;;  %v2449_v0 = vmul.f32 %v2401_v53, %v2290_v19  ;;  %4048 = vmatprep.subr.bf16.mxu0 %v4639_v23  ;;  %v1766_v45 = vmul.f32 %v1709_v22, %v1589_v29 }
 0x1f0   :  { %4049 = vmatpush1.bf16.msra.mxu0 %v4638_v51  ;;  %v1273_v51 = vrot.slane %v6141_v8, %v5269_v43 }
 0x1f1   :  { %v4640_v9 = vpack.c.bf16 %v2448_v63, %v2108_v50  ;;  %v1585_v7 = vpop.permute.xlu1 %1584  ;;  %v1583_v33 = vpop.permute.xlu0 %1582  ;;  %v4641_v4 = vpack.c.bf16 %v2449_v0, %v2109_v48 }
 0x1f2   :  { %v1610_v47 = vsel %vm1586_vm4, %v1585_v7, %v5109_v34  ;;  %v1587_v12 = vsel %vm1586_vm4, %v1583_v33, %v1585_v7  ;;  %v1588_v38 = vsel %vm1586_vm4, %v1581_v31, %v1583_v33  ;;  %v4688_v34 = vld [vmem:[#allocation3 + $0xa0] sm:$0xff]  ;;  %v1265_v31 = vrot.slane %v6141_v8, %v5246_v11 }
 0x1f3   :  { %v1769_v44 = vmul.f32 %v1721_v3, %v1610_v47  ;;  %v1767_v41 = vmul.f32 %v1713_v26, %v1588_v38  ;;  %v1768_v17 = vmul.f32 %v1717_v46, %v1587_v12  ;;  %4089 = vmatprep.subr.bf16.mxu1 %v4641_v4  ;;  %v4614_v42 = vpack.c.bf16 %v1766_v45, %v4688_v34 }
 0x1f4   :  { %4090 = vmatpush1.bf16.msra.mxu1 %v4640_v9  ;;  %v581_v12 = vrot.slane %v6185_v35, %v5232_v59  ;;  %v589_v34 = vrot.slane %v6185_v35, %v5257_v37 }
 0x1f5   :  { %v4616_v61 = vpack.c.bf16 %v1768_v17, %v5826_v54  ;;  %v793_v27 = vpop.permute.xlu1 %792  ;;  %v791_v21 = vpop.permute.xlu0 %790  ;;  %v4615_v15 = vpack.c.bf16 %v1767_v41, %v5828_v14  ;;  %v4617_v53 = vpack.c.bf16 %v1769_v44, %v5866_v16  ;;  %v929_v16 = vrot.slane %v6139_v58, %v5257_v37 }
 0x1f6   :  { %v801_v30 = vsel %vm798_vm5, %v791_v21, %v793_v27  ;;  %v802_v3 = vsel %vm798_vm5, %v6143_v1, %v791_v21 }
 0x1f7   :  { %4050 = vmatprep.subr.bf16.mxu0 %v4615_v15  ;;  %4091 = vmatprep.subr.bf16.mxu1 %v4617_v53  ;;  %v979_v26 = vmul.f32 %v925_v60, %v801_v30  ;;  %v593_v15 = vrot.slane %v6185_v35, %v5269_v43  ;;  %v585_v53 = vrot.slane %v6185_v35, %v5246_v11 }
 0x1f8   :  { %4051 = vmatpush1.bf16.msra.mxu0 %v4614_v42  ;;  %4092 = vmatpush1.bf16.msra.mxu1 %v4616_v61  ;;  %v249_v61 = vrot.slane %v6183_v10, %v5257_v37 }
 0x1f9   :  { %v1131_v55 = vpop.permute.xlu1 %1130  ;;  %v795_v54 = vpop.permute.xlu0 %794 }
 0x1fa   :  { %v1142_v14 = vsel %vm1138_vm6, %v6176_v40, %v1131_v55  ;;  %v800_v22 = vsel %vm798_vm5, %v793_v27, %v795_v54  ;;  %v921_v40 = vrot.slane %v6139_v58, %v5232_v59  ;;  %v799_v23 = vsel %vm798_vm5, %v795_v54, %v5167_v39 }
 0x1fb   :  { %v1318_v48 = vmul.f32 %v1261_v57, %v1142_v14  ;;  %v980_v46 = vmul.f32 %v929_v16, %v800_v22  ;;  %v981_v39 = vmul.f32 %v933_v32, %v799_v23  ;;  %v253_v27 = vrot.slane %v6183_v10, %v5269_v43 }
 0x1fc   :  { %v978_v1 = vmul.f32 %v921_v40, %v802_v3  ;;  %v6445_v40 = vld [vmem:[#allocation12_spill] sm:$0xff]  ;;  %v6446_v3 = vld [vmem:[#allocation13_spill] sm:$0xff] }
 0x1fd   :  { %v1135_v28 = vpop.permute.xlu1 %1134  ;;  %v1133_v19 = vpop.permute.xlu0 %1132 }
 0x1fe   :  { %v1139_v8 = vsel %vm1138_vm6, %v1135_v28, %v5191_v62  ;;  %v1140_v58 = vsel %vm1138_vm6, %v1133_v19, %v1135_v28  ;;  %v1141_v50 = vsel %vm1138_vm6, %v1131_v55, %v1133_v19  ;;  %v4590_v47 = vpack.c.bf16 %v1318_v48, %v978_v1 }
 0x1ff   :  { %v1321_v29 = vmul.f32 %v1273_v51, %v1139_v8  ;;  %v1319_v63 = vmul.f32 %v1265_v31, %v1141_v50  ;;  %v1320_v0 = vmul.f32 %v1269_v49, %v1140_v58  ;;  %v245_v62 = vrot.slane %v6183_v10, %v5246_v11  ;;  %v6444_v31 = vld [vmem:[#allocation14_spill] sm:$0xff] }
 0x201   :  { %v4592_v9 = vpack.c.bf16 %v1320_v0, %v980_v46  ;;  %v112_v7 = vpop.permute.xlu1 %111  ;;  %v110_v33 = vpop.permute.xlu0 %109  ;;  %v4591_v4 = vpack.c.bf16 %v1319_v63, %v979_v26  ;;  %v4593_v45 = vpack.c.bf16 %v1321_v29, %v981_v39 }
 0x202   :  { %v122_v41 = vsel %vm119_vm7, %v110_v33, %v112_v7  ;;  %v123_v60 = vsel %vm119_vm7, %v6187_v24, %v110_v33 }
 0x203   :  { %4052 = vmatprep.subr.bf16.mxu0 %v4591_v4  ;;  %4093 = vmatprep.subr.bf16.mxu1 %v4593_v45  ;;  %v299_v57 = vmul.f32 %v245_v62, %v122_v41 }
 0x204   :  { %4053 = vmatpush1.bf16.msra.mxu0 %v4590_v47  ;;  %4094 = vmatpush1.bf16.msra.mxu1 %v4592_v9 }
 0x205   :  { %v451_v38 = vpop.permute.xlu1 %450  ;;  %v114_v44 = vpop.permute.xlu0 %113 }
 0x206   :  { %v462_v17 = vsel %vm458_vm8, %v6220_v5, %v451_v38  ;;  %v121_v21 = vsel %vm119_vm7, %v112_v7, %v114_v44  ;;  %v241_v5 = vrot.slane %v6183_v10, %v5232_v59  ;;  %v120_v42 = vsel %vm119_vm7, %v114_v44, %v5254_v56 }
 0x207   :  { %v638_v55 = vmul.f32 %v581_v12, %v462_v17  ;;  %v300_v30 = vmul.f32 %v249_v61, %v121_v21  ;;  %v301_v56 = vmul.f32 %v253_v27, %v120_v42 }
 0x208   :  { %v298_v24 = vmul.f32 %v241_v5, %v123_v60 }
 0x209   :  { %v455_v43 = vpop.permute.xlu1 %454  ;;  %v453_v54 = vpop.permute.xlu0 %452 }
 0x20a   :  { %v459_v11 = vsel %vm458_vm8, %v455_v43, %v5252_v25  ;;  %v460_v59 = vsel %vm458_vm8, %v453_v54, %v455_v43  ;;  %v461_v37 = vsel %vm458_vm8, %v451_v38, %v453_v54  ;;  %v4566_v51 = vpack.c.bf16 %v638_v55, %v298_v24 }
 0x20b   :  { %v641_v10 = vmul.f32 %v593_v15, %v459_v11  ;;  %v639_v35 = vmul.f32 %v585_v53, %v461_v37  ;;  %v640_v14 = vmul.f32 %v589_v34, %v460_v59 }
 0x20d   :  { %v4568_v16 = vpack.c.bf16 %v640_v14, %v300_v30  ;;  %v4567_v32 = vpack.c.bf16 %v639_v35, %v299_v57  ;;  %v4569_v22 = vpack.c.bf16 %v641_v10, %v301_v56 }
 0x20f   :  { %4054 = vmatprep.subr.bf16.mxu0 %v4567_v32  ;;  %4095 = vmatprep.subr.bf16.mxu1 %v4569_v22 }
 0x210   :  { %4055 = vmatpush1.bf16.msra.mxu0 %v4566_v51  ;;  %4096 = vmatpush1.bf16.msra.mxu1 %v4568_v16 }
 0x213   :  { %4435 = vmatmul.mubr.msk.bf16.vlgmr.msra.gmra.mxu0 %vm3553_vm9, %v6043_v13  ;;  %4437 = vmatmul.mubr.msk.bf16.vlgmr.msra.gmra.mxu1 %vm3553_vm9, %v6043_v13 }
 0x216   :  { %v6396_v20 = vpop.permute.xlu0 %3010 }
 0x217   :  { %v3665_v25 = vadd.f32 %v6064_v2, %v6396_v20  ;;  %v3667_v49 = vadd.f32 %v6444_v31, %v6396_v20  ;;  %v3706_v23 = vadd.f32 %v6445_v40, %v6396_v20  ;;  %v3708_v26 = vadd.f32 %v6446_v3, %v6396_v20 }
 0x218   :  { %v3747_v48 = vadd.f32 %v6243_v18, %v6396_v20  ;;  %v3788_v13 = vadd.f32 %v6257_v36, %v6396_v20  ;;  %v3749_v28 = vadd.f32 %v6250_v52, %v6396_v20  ;;  %v3790_v2 = vadd.f32 %v6263_v6, %v6396_v20 }
 0x219   :  { %v4122_v19 = vmax.f32 %v3665_v25, 0.0  ;;  %v4123_v46 = vmax.f32 %v3667_v49, 0.0  ;;  %v4124_v8 = vmax.f32 %v3706_v23, 0.0  ;;  %v4125_v58 = vmax.f32 %v3708_v26, 0.0 }
 0x21a   :  { %v4126_v50 = vmax.f32 %v3747_v48, 0.0  ;;  %v4128_v39 = vmax.f32 %v3788_v13, 0.0  ;;  %v4127_v29 = vmax.f32 %v3749_v28, 0.0  ;;  %v4129_v63 = vmax.f32 %v3790_v2, 0.0 }
 0x21b   :  { %4146 = vst [vmem:[#allocation8] sm:$0xff] %v4122_v19  ;;  %4147 = vst [vmem:[#allocation8 + $0x8] sm:$0xff] %v4123_v46 }
 0x21c   :  { %4148 = vst [vmem:[#allocation8 + $0x10] sm:$0xff] %v4124_v8  ;;  %4149 = vst [vmem:[#allocation8 + $0x18] sm:$0xff] %v4125_v58 }
 0x21d   :  { %4150 = vst [vmem:[#allocation8 + $0x20] sm:$0xff] %v4126_v50  ;;  %4152 = vst [vmem:[#allocation8 + $0x30] sm:$0xff] %v4128_v39 }
 0x21e   :  { %4151 = vst [vmem:[#allocation8 + $0x28] sm:$0xff] %v4127_v29  ;;  %4153 = vst [vmem:[#allocation8 + $0x38] sm:$0xff] %v4129_v63 }
 0x220   :  { %v3828_v18 = vpop.f32.mrf.mxu0 }
 0x221   :  { %v3829_v52 = vadd.f32 %v3828_v18, %v6396_v20 }
 0x222   :  { %v3830_v36 = vpop.f32.mrf.mxu0 }
 0x223   :  { %v4130_v6 = vmax.f32 %v3829_v52, 0.0  ;;  %v3831_v0 = vadd.f32 %v3830_v36, %v6396_v20 }
 0x224   :  { %v3869_v1 = vpop.f32.mrf.mxu1  ;;  %v3832_v9 = vpop.f32.mrf.mxu0 }
 0x225   :  { %4154 = vst [vmem:[#allocation8 + $0x40] sm:$0xff] %v4130_v6  ;;  %v3870_v7 = vadd.f32 %v3869_v1, %v6396_v20  ;;  %v4131_v33 = vmax.f32 %v3831_v0, 0.0 }
 0x226   :  { %v3871_v4 = vpop.f32.mrf.mxu1  ;;  %v3833_v45 = vpop.f32.mrf.mxu0 }
 0x227   :  { %v4132_v47 = vmax.f32 %v3870_v7, 0.0  ;;  %4155 = vst [vmem:[#allocation8 + $0x48] sm:$0xff] %v4131_v33  ;;  %v3872_v62 = vadd.f32 %v3871_v4, %v6396_v20 }
 0x228   :  { %v3873_v12 = vpop.f32.mrf.mxu1 }
 0x229   :  { %4156 = vst [vmem:[#allocation8 + $0x50] sm:$0xff] %v4132_v47  ;;  %v4133_v38 = vmax.f32 %v3872_v62, 0.0 }
 0x22a   :  { %v3874_v44 = vpop.f32.mrf.mxu1 }
 0x22b   :  { %4157 = vst [vmem:[#allocation8 + $0x58] sm:$0xff] %v4133_v38 }
 0x25f   :  { %v3910_v41 = vpop.f32.mrf.mxu0 }
 0x260   :  { %v3911_v17 = vadd.f32 %v3910_v41, %v6396_v20 }
 0x261   :  { %v3912_v61 = vpop.f32.mrf.mxu0 }
 0x262   :  { %v4134_v27 = vmax.f32 %v3911_v17, 0.0  ;;  %v3913_v21 = vadd.f32 %v3912_v61, %v6396_v20 }
 0x263   :  { %v3951_v15 = vpop.f32.mrf.mxu1  ;;  %v3914_v53 = vpop.f32.mrf.mxu0 }
 0x264   :  { %4158 = vst [vmem:[#allocation8 + $0x60] sm:$0xff] %v4134_v27  ;;  %v3952_v34 = vadd.f32 %v3951_v15, %v6396_v20  ;;  %v4135_v5 = vmax.f32 %v3913_v21, 0.0 }
 0x265   :  { %v3953_v42 = vpop.f32.mrf.mxu1  ;;  %v3915_v60 = vpop.f32.mrf.mxu0 }
 0x266   :  { %v4136_v57 = vmax.f32 %v3952_v34, 0.0  ;;  %4159 = vst [vmem:[#allocation8 + $0x68] sm:$0xff] %v4135_v5  ;;  %v3954_v55 = vadd.f32 %v3953_v42, %v6396_v20 }
 0x267   :  { %v3955_v43 = vpop.f32.mrf.mxu1 }
 0x268   :  { %4160 = vst [vmem:[#allocation8 + $0x70] sm:$0xff] %v4136_v57  ;;  %v4137_v54 = vmax.f32 %v3954_v55, 0.0 }
 0x269   :  { %v3956_v30 = vpop.f32.mrf.mxu1 }
 0x26a   :  { %4161 = vst [vmem:[#allocation8 + $0x78] sm:$0xff] %v4137_v54 }
 0x29f   :  { %v3992_v11 = vpop.f32.mrf.mxu0 }
 0x2a0   :  { %v3993_v59 = vadd.f32 %v3992_v11, %v6396_v20 }
 0x2a1   :  { %v3994_v37 = vpop.f32.mrf.mxu0 }
 0x2a2   :  { %v4138_v56 = vmax.f32 %v3993_v59, 0.0  ;;  %v3995_v10 = vadd.f32 %v3994_v37, %v6396_v20 }
 0x2a3   :  { %v4033_v35 = vpop.f32.mrf.mxu1  ;;  %v3996_v14 = vpop.f32.mrf.mxu0 }
 0x2a4   :  { %4162 = vst [vmem:[#allocation8 + $0x80] sm:$0xff] %v4138_v56  ;;  %v4034_v24 = vadd.f32 %v4033_v35, %v6396_v20  ;;  %v4139_v16 = vmax.f32 %v3995_v10, 0.0 }
 0x2a5   :  { %v4035_v32 = vpop.f32.mrf.mxu1  ;;  %v3997_v22 = vpop.f32.mrf.mxu0 }
 0x2a6   :  { %v4140_v51 = vmax.f32 %v4034_v24, 0.0  ;;  %4163 = vst [vmem:[#allocation8 + $0x88] sm:$0xff] %v4139_v16  ;;  %v4036_v25 = vadd.f32 %v4035_v32, %v6396_v20 }
 0x2a7   :  { %v4037_v31 = vpop.f32.mrf.mxu1 }
 0x2a8   :  { %4164 = vst [vmem:[#allocation8 + $0x90] sm:$0xff] %v4140_v51  ;;  %v4141_v49 = vmax.f32 %v4036_v25, 0.0 }
 0x2a9   :  { %v4038_v40 = vpop.f32.mrf.mxu1 }
 0x2aa   :  { %4165 = vst [vmem:[#allocation8 + $0x98] sm:$0xff] %v4141_v49 }
 0x2d3   :  { %v4074_v23 = vpop.f32.mrf.mxu0  ;;  %v4115_v3 = vpop.f32.mrf.mxu1 }
 0x2d4   :  { %v4075_v26 = vadd.f32 %v4074_v23, %v6396_v20  ;;  %v4116_v48 = vadd.f32 %v4115_v3, %v6396_v20 }
 0x2d5   :  { %v4076_v13 = vpop.f32.mrf.mxu0  ;;  %v4117_v28 = vpop.f32.mrf.mxu1 }
 0x2d6   :  { %v4142_v2 = vmax.f32 %v4075_v26, 0.0  ;;  %v4144_v19 = vmax.f32 %v4116_v48, 0.0  ;;  %v4077_v46 = vadd.f32 %v4076_v13, %v6396_v20  ;;  %v4118_v8 = vadd.f32 %v4117_v28, %v6396_v20 }
 0x2d7   :  { %v4078_v58 = vpop.f32.mrf.mxu0  ;;  %v4119_v50 = vpop.f32.mrf.mxu1 }
 0x2d8   :  { %4166 = vst [vmem:[#allocation8 + $0xa0] sm:$0xff] %v4142_v2  ;;  %4168 = vst [vmem:[#allocation8 + $0xb0] sm:$0xff] %v4144_v19  ;;  %v4143_v39 = vmax.f32 %v4077_v46, 0.0  ;;  %v4145_v29 = vmax.f32 %v4118_v8, 0.0 }
 0x2d9   :  { %v4079_v63 = vpop.f32.mrf.mxu0  ;;  %v4120_v18 = vpop.f32.mrf.mxu1 }
 0x2da   :  { %4167 = vst [vmem:[#allocation8 + $0xa8] sm:$0xff] %v4143_v39  ;;  %4169 = vst [vmem:[#allocation8 + $0xb8] sm:$0xff] %v4145_v29 }
 0x2db   :  { %4740 = shalt.err (!%p4737_p0)
}
 0x2dc   :  { %4179 = dma.vmem_to_hbm [thread:$0]  %s4177_s12, 3072, %s6437_s4, [#allocation5]  }
 0x2dd   :  { %4753 = dma.done.wait [#allocation5], 3072  }
 0x2de   :  { %4754 = vsyncadd [#allocation5], 4294964224 }
 0x2df   :  { %4183 = vsyncpa [#allocation4], 1 }
 0x2e0   :  { %4184 = vsyncpa [#allocation7], 1 }
 0x2e1   :  { %4185 = vsyncpa [#allocation5], 1 }

</bundles_post_ra>
